<compile_context>
chip_gen: v7x
topology: tpu7x:2x2x1
jax: 0.10.0
libtpu: 0.0.40
codegen_flags: <defaults>
</compile_context>

<pallas_src>
import numpy as np

import jax
import jax.numpy as jnp
from jax import lax
from jax.experimental import pallas as pl
from jax.experimental.pallas import tpu as pltpu

# ---- model config (small, consistent with the module) ----
HIDDEN = 32
NUM_HEADS = 4
NUM_KV_HEADS = 2
HEAD_DIM = HIDDEN // NUM_HEADS          # 8
HALF = HEAD_DIM // 2                    # 4
GROUP = NUM_HEADS // NUM_KV_HEADS       # 2
INTERMEDIATE = 64
VOCAB = 128
NUM_LAYERS = 2
RMS_EPS = 1e-6
ROPE_THETA = 10000.0
SCALE = HEAD_DIM ** -0.5

Q_SIZE = NUM_HEADS * HEAD_DIM           # 32
KV_SIZE = NUM_KV_HEADS * HEAD_DIM       # 16
QKV_SIZE = Q_SIZE + 2 * KV_SIZE         # 64

ACT_DTYPE = jnp.float32                 # activations / norm / softmax math
MXU_DTYPE = jnp.bfloat16                # matmul operand dtype (weights stored bf16)
NEG_INF = -1e30


# ---------------- host-side constants ----------------
def _rotate_half_matrix(num_heads_in_slab):
    """Signed block-diagonal permutation: (x @ R) == neox rotate_half(x)."""
    width = num_heads_in_slab * HEAD_DIM
    m = np.zeros((width, width), np.float32)
    for h0 in range(0, width, HEAD_DIM):
        for j in range(HALF):
            m[h0 + HALF + j, h0 + j] = -1.0     # first-half output <- -x2
            m[h0 + j, h0 + HALF + j] = 1.0      # second-half output <- +x1
    return m


_ROT_Q_NP = _rotate_half_matrix(NUM_HEADS)      # (Q_SIZE, Q_SIZE)
_ROT_K_NP = _rotate_half_matrix(NUM_KV_HEADS)   # (KV_SIZE, KV_SIZE)


def _rope_tables(positions, num_heads_in_slab):
    """Full-width neox cos/sin tables tiled across all heads of a slab."""
    inv_freq = 1.0 / (ROPE_THETA **
                      (jnp.arange(HALF, dtype=jnp.float32) * 2.0 / HEAD_DIM))
    freqs = positions.astype(jnp.float32)[:, None] * inv_freq[None, :]   # (T, HALF)
    cos = jnp.concatenate([jnp.cos(freqs), jnp.cos(freqs)], axis=-1)     # (T, D)
    sin = jnp.concatenate([jnp.sin(freqs), jnp.sin(freqs)], axis=-1)     # (T, D)
    return (jnp.tile(cos, (1, num_heads_in_slab)),
            jnp.tile(sin, (1, num_heads_in_slab)))


# ---------------- in-kernel helpers ----------------
def _rms_norm_f32(s, w):                 # s: (T, H) f32, w: (1, H) f32
    var = jnp.mean(s * s, axis=-1, keepdims=True)
    return s * lax.rsqrt(var + RMS_EPS) * w


# ---------------- the whole-model fused kernel (grid over layers) ----------------
def _llama_kernel(x_ref, cos_q_ref, sin_q_ref, cos_k_ref, sin_k_ref,
                  rot_q_ref, rot_k_ref, mask_ref,
                  ln_ref, w_qkv_ref, w_o_ref, w_gate_ref, w_up_ref, w_down_ref,
                  final_ln_ref, w_lm_ref,
                  logits_ref,
                  h_scr, res_scr):
    layer = pl.program_id(0)
    T = x_ref.shape[0]

    # ----- residual carry in VMEM scratch (layer 0: residual := embeddings) -----
    @pl.when(layer == 0)
    def _():
        res_scr[...] = x_ref[...]

    @pl.when(layer > 0)
    def _():
        res_scr[...] = h_scr[...] + res_scr[...]

    resid = res_scr[...]                                          # (T, H) f32

    ln_w = ln_ref[0]                                              # (2, H) f32
    h = _rms_norm_f32(resid, ln_w[0:1, :]).astype(MXU_DTYPE)

    # ----- QKV projection (SCALE already folded into the Q columns) -----
    qkv = jnp.dot(h, w_qkv_ref[0], preferred_element_type=jnp.float32)  # (T, 64) f32
    q = qkv[:, :Q_SIZE]
    k = qkv[:, Q_SIZE:Q_SIZE + KV_SIZE]
    v = qkv[:, Q_SIZE + KV_SIZE:]

    # ----- full-width neox RoPE: x*cos + rotate_half(x)*sin, rotate_half as one
    #       signed-permutation matmul per slab (rides the MXU, no lane slicing) ----
    q_rot = (q * cos_q_ref[...] +
             jnp.dot(q.astype(MXU_DTYPE), rot_q_ref[...],
                     preferred_element_type=jnp.float32) * sin_q_ref[...])
    k_rot = (k * cos_k_ref[...] +
             jnp.dot(k.astype(MXU_DTYPE), rot_k_ref[...],
                     preferred_element_type=jnp.float32) * sin_k_ref[...])

    # ----- causal GQA attention: GROUP query heads sharing a KV head are stacked
    #       along rows into one (GROUP*T, D) matmul; O-proj is folded into the
    #       loop as f32 accumulation (acc starts at resid => residual add fused) --
    w_o = w_o_ref[0]                                              # (NH, D, H) bf16
    acc = resid
    for j in range(NUM_KV_HEADS):
        q_stack = jnp.concatenate(
            [q_rot[:, (j * GROUP + g) * HEAD_DIM:(j * GROUP + g + 1) * HEAD_DIM]
             for g in range(GROUP)], axis=0).astype(MXU_DTYPE)    # (G*T, D)
        k_j = k_rot[:, j * HEAD_DIM:(j + 1) * HEAD_DIM].astype(MXU_DTYPE)   # (T, D)
        v_j = v[:, j * HEAD_DIM:(j + 1) * HEAD_DIM].astype(MXU_DTYPE)       # (T, D)

        sc = jnp.dot(q_stack, k_j.T, preferred_element_type=jnp.float32)    # (G*T, T)
        sc = sc + mask_ref[...]                                   # additive causal bias
        m = jnp.max(sc, axis=-1, keepdims=True)
        p = jnp.exp(sc - m)
        p = p * pl.reciprocal(jnp.sum(p, axis=-1, keepdims=True), approx=True)
        o_j = jnp.dot(p.astype(MXU_DTYPE), v_j,
                      preferred_element_type=jnp.float32)         # (G*T, D)

        for g in range(GROUP):
            acc = acc + jnp.dot(o_j[g * T:(g + 1) * T].astype(MXU_DTYPE),
                                w_o[j * GROUP + g],
                                preferred_element_type=jnp.float32)

    # ----- post-attention add-then-norm + MLP (gate/up -> SiLU*mul -> down) -----
    res_scr[...] = acc                                            # new residual
    h2 = _rms_norm_f32(acc, ln_w[1:2, :]).astype(MXU_DTYPE)
    gate = jnp.dot(h2, w_gate_ref[0], preferred_element_type=jnp.float32)
    up = jnp.dot(h2, w_up_ref[0], preferred_element_type=jnp.float32)
    act = (gate * jax.nn.sigmoid(gate) * up).astype(MXU_DTYPE)    # SiluAndMul, f32 math
    h_scr[...] = jnp.dot(act, w_down_ref[0], preferred_element_type=jnp.float32)

    # ----- final RMSNorm + lm_head on the last layer (lane-dense (T, 128) out) ---
    @pl.when(layer == pl.num_programs(0) - 1)
    def _():
        s_final = h_scr[...] + res_scr[...]
        h3 = _rms_norm_f32(s_final, final_ln_ref[...]).astype(MXU_DTYPE)
        logits_ref[...] = jnp.dot(
            h3, w_lm_ref[...], preferred_element_type=jnp.float32
        ).astype(logits_ref.dtype)


# ---------------- wrapper ----------------
def llama_forward(input_ids, positions, params):
    # TODO(synk): embedding gather + last-token logits selection kept in plain JAX.
    x = params["embed"][input_ids].astype(ACT_DTYPE)              # (T, H)
    T = x.shape[0]

    cos_q, sin_q = _rope_tables(positions, NUM_HEADS)             # (T, Q_SIZE)
    cos_k, sin_k = _rope_tables(positions, NUM_KV_HEADS)          # (T, KV_SIZE)
    rot_q = jnp.asarray(_ROT_Q_NP, MXU_DTYPE)
    rot_k = jnp.asarray(_ROT_K_NP, MXU_DTYPE)

    row = jnp.arange(T, dtype=jnp.int32)[:, None]
    col = jnp.arange(T, dtype=jnp.int32)[None, :]
    bias = jnp.where(col <= row, 0.0, NEG_INF).astype(jnp.float32)          # (T, T)
    mask = jnp.tile(bias, (GROUP, 1))                                       # (G*T, T)

    def inv(*shape):          # layer-invariant block: DMA'd once, stays VMEM-resident
        n = len(shape)
        return pl.BlockSpec(shape, lambda l, n=n: (0,) * n)

    def per_layer(*shape):    # (L, ...) stacked weights: double-buffered over layers
        n = len(shape)
        return pl.BlockSpec((1,) + shape, lambda l, n=n: (l,) + (0,) * n)

    grid_spec = pltpu.PrefetchScalarGridSpec(
        num_scalar_prefetch=0,
        grid=(NUM_LAYERS,),
        in_specs=[
            inv(T, HIDDEN),                       # x (embeddings)
            inv(T, Q_SIZE), inv(T, Q_SIZE),       # cos_q, sin_q
            inv(T, KV_SIZE), inv(T, KV_SIZE),     # cos_k, sin_k
            inv(Q_SIZE, Q_SIZE),                  # rotate-half matrix (Q slab)
            inv(KV_SIZE, KV_SIZE),                # rotate-half matrix (K slab)
            inv(GROUP * T, T),                    # causal bias (stacked rows)
            per_layer(2, HIDDEN),                 # input_ln / post_attention_ln
            per_layer(HIDDEN, QKV_SIZE),          # w_qkv (Q cols pre-scaled)
            per_layer(NUM_HEADS, HEAD_DIM, HIDDEN),   # w_o
            per_layer(HIDDEN, INTERMEDIATE),      # w_gate
            per_layer(HIDDEN, INTERMEDIATE),      # w_up
            per_layer(INTERMEDIATE, HIDDEN),      # w_down
            inv(1, HIDDEN),                       # final_ln
            inv(HIDDEN, VOCAB),                   # lm_head
        ],
        out_specs=pl.BlockSpec((T, VOCAB), lambda l: (0, 0)),
        scratch_shapes=[pltpu.VMEM((T, HIDDEN), jnp.float32),    # h (mlp out)
                        pltpu.VMEM((T, HIDDEN), jnp.float32)],   # residual
    )

    return pl.pallas_call(
        _llama_kernel,
        out_shape=jax.ShapeDtypeStruct((T, VOCAB), jnp.float32),
        grid_spec=grid_spec,
        compiler_params=pltpu.CompilerParams(
            dimension_semantics=("arbitrary",)),  # layer axis is a sequential carry
    )(x, cos_q, sin_q, cos_k, sin_k, rot_q, rot_k, mask,
      params["ln"], params["w_qkv"], params["w_o"],
      params["w_gate"], params["w_up"], params["w_down"],
      params["final_ln"], params["w_lm_head"])


# ---------------- pure-JAX reference (f32, textbook per-head rotate-half) ----------------
def llama_forward_ref(input_ids, positions, params):
    x = params["embed"][input_ids].astype(jnp.float32)
    T = x.shape[0]
    inv_freq = 1.0 / (ROPE_THETA **
                      (jnp.arange(HALF, dtype=jnp.float32) * 2.0 / HEAD_DIM))
    freqs = positions.astype(jnp.float32)[:, None] * inv_freq[None, :]
    cos, sin = jnp.cos(freqs), jnp.sin(freqs)
    row = jnp.arange(T)[:, None]
    col = jnp.arange(T)[None, :]
    bias = jnp.where(col <= row, 0.0, NEG_INF)

    def norm(s, w):
        return s * lax.rsqrt(jnp.mean(s * s, -1, keepdims=True) + RMS_EPS) * w

    def rope(slab):
        outs = []
        for h in range(slab.shape[-1] // HEAD_DIM):
            xh = slab[:, h * HEAD_DIM:(h + 1) * HEAD_DIM]
            x1, x2 = xh[:, :HALF], xh[:, HALF:]
            outs.append(jnp.concatenate([x1 * cos - x2 * sin,
                                         x2 * cos + x1 * sin], axis=-1))
        return jnp.concatenate(outs, axis=-1)

    hidden, residual = x, None
    for l in range(NUM_LAYERS):
        if residual is None:
            residual = hidden
        else:
            residual = hidden + residual
        h = norm(residual, params["ln"][l, 0])
        qkv = h @ params["w_qkv"][l].astype(jnp.float32)
        q = rope(qkv[:, :Q_SIZE])
        k = rope(qkv[:, Q_SIZE:Q_SIZE + KV_SIZE])
        v = qkv[:, Q_SIZE + KV_SIZE:]
        wo = params["w_o"][l].astype(jnp.float32)
        attn_out = jnp.zeros((T, HIDDEN), jnp.float32)
        for hh in range(NUM_HEADS):
            j = hh // GROUP
            qh = q[:, hh * HEAD_DIM:(hh + 1) * HEAD_DIM]
            kj = k[:, j * HEAD_DIM:(j + 1) * HEAD_DIM]
            vj = v[:, j * HEAD_DIM:(j + 1) * HEAD_DIM]
            p = jax.nn.softmax(qh @ kj.T + bias, axis=-1)
            attn_out = attn_out + (p @ vj) @ wo[hh]
        residual = attn_out + residual
        h2 = norm(residual, params["ln"][l, 1])
        gate = h2 @ params["w_gate"][l].astype(jnp.float32)
        up = h2 @ params["w_up"][l].astype(jnp.float32)
        hidden = (gate * jax.nn.sigmoid(gate) * up) @ params["w_down"][l].astype(jnp.float32)
    final = norm(hidden + residual, params["final_ln"])
    return final @ params["w_lm_head"].astype(jnp.float32)


# ---------------- parameter init ----------------
def init_params(key):
    ks = jax.random.split(key, 7)
    std = 0.02

    def rnd(k, shape):
        return std * jax.random.normal(k, shape, dtype=jnp.float32)

    # weights stored as [in, out] (transpose of nn.Linear's [out, in])
    w_qkv = rnd(ks[0], (NUM_LAYERS, HIDDEN, QKV_SIZE))
    w_qkv = w_qkv.at[:, :, :Q_SIZE].multiply(SCALE)   # fold head_dim**-0.5 into Q
    return {
        "embed": rnd(ks[1], (VOCAB, HIDDEN)).astype(ACT_DTYPE),
        "ln": jnp.ones((NUM_LAYERS, 2, HIDDEN), ACT_DTYPE),       # [input, post_attn]
        "final_ln": jnp.ones((1, HIDDEN), ACT_DTYPE),
        "w_qkv": w_qkv.astype(MXU_DTYPE),
        "w_o": rnd(ks[2], (NUM_LAYERS, NUM_HEADS, HEAD_DIM, HIDDEN)).astype(MXU_DTYPE),
        "w_gate": rnd(ks[3], (NUM_LAYERS, HIDDEN, INTERMEDIATE)).astype(MXU_DTYPE),
        "w_up": rnd(ks[4], (NUM_LAYERS, HIDDEN, INTERMEDIATE)).astype(MXU_DTYPE),
        "w_down": rnd(ks[5], (NUM_LAYERS, INTERMEDIATE, HIDDEN)).astype(MXU_DTYPE),
        "w_lm_head": rnd(ks[6], (HIDDEN, VOCAB)).astype(MXU_DTYPE),
    }


if __name__ == "__main__":
    key = jax.random.PRNGKey(0)
    k_param, k_ids = jax.random.split(key)
    params = init_params(k_param)

    T = 8
    input_ids = jax.random.randint(k_ids, (T,), 0, VOCAB, dtype=jnp.int32)
    positions = jnp.arange(T, dtype=jnp.int32)

    logits = jax.jit(llama_forward)(input_ids, positions, params)
    jax.block_until_ready(logits)

    assert logits.shape == (T, VOCAB)
    assert bool(jnp.all(jnp.isfinite(logits)))

    # tolerance-based reference check (bf16 MXU operands + approx reciprocal)
    ref = llama_forward_ref(input_ids, positions, params)
    max_err = float(jnp.max(jnp.abs(logits - ref)))
    assert max_err < 2e-2, f"mismatch vs reference: {max_err}"

    print("KERNEL_OK")
</pallas_src>

<mosaic_0001>
module attributes {stable_mosaic.version = 11 : i64} {
  func.func @_llama_kernel(%arg0: i32, %arg1: memref<8x32xf32, #tpu.memory_space<vmem>>, %arg2: memref<8x32xf32, #tpu.memory_space<vmem>>, %arg3: memref<8x32xf32, #tpu.memory_space<vmem>>, %arg4: memref<8x16xf32, #tpu.memory_space<vmem>>, %arg5: memref<8x16xf32, #tpu.memory_space<vmem>>, %arg6: memref<32x32xbf16, #tpu.memory_space<vmem>>, %arg7: memref<16x16xbf16, #tpu.memory_space<vmem>>, %arg8: memref<16x8xf32, #tpu.memory_space<vmem>>, %arg9: memref<1x2x32xf32, #tpu.memory_space<vmem>>, %arg10: memref<1x32x64xbf16, #tpu.memory_space<vmem>>, %arg11: memref<1x4x8x32xbf16, #tpu.memory_space<vmem>>, %arg12: memref<1x32x64xbf16, #tpu.memory_space<vmem>>, %arg13: memref<1x32x64xbf16, #tpu.memory_space<vmem>>, %arg14: memref<1x64x32xbf16, #tpu.memory_space<vmem>>, %arg15: memref<1x32xf32, #tpu.memory_space<vmem>>, %arg16: memref<32x128xbf16, #tpu.memory_space<vmem>>, %arg17: memref<8x128xf32, #tpu.memory_space<vmem>>, %arg18: memref<8x32xf32, #tpu.memory_space<vmem>>, %arg19: memref<8x32xf32, #tpu.memory_space<vmem>>) attributes {dimension_semantics = [#tpu.dimension_semantics<arbitrary>], iteration_bounds = array<i64: 2>, scalar_prefetch = 0 : i64, scratch_operands = 2 : i64, tpu.core_type = #tpu.core_type<tc>, window_params = [{pipeline_mode = #tpu.pipeline_mode<synchronous>, transform_indices = @transform_0, window_bounds = array<i64: 8, 32>}, {pipeline_mode = #tpu.pipeline_mode<synchronous>, transform_indices = @transform_1, window_bounds = array<i64: 8, 32>}, {pipeline_mode = #tpu.pipeline_mode<synchronous>, transform_indices = @transform_2, window_bounds = array<i64: 8, 32>}, {pipeline_mode = #tpu.pipeline_mode<synchronous>, transform_indices = @transform_3, window_bounds = array<i64: 8, 16>}, {pipeline_mode = #tpu.pipeline_mode<synchronous>, transform_indices = @transform_4, window_bounds = array<i64: 8, 16>}, {pipeline_mode = #tpu.pipeline_mode<synchronous>, transform_indices = @transform_5, window_bounds = array<i64: 32, 32>}, {pipeline_mode = #tpu.pipeline_mode<synchronous>, transform_indices = @transform_6, window_bounds = array<i64: 16, 16>}, {pipeline_mode = #tpu.pipeline_mode<synchronous>, transform_indices = @transform_7, window_bounds = array<i64: 16, 8>}, {transform_indices = @transform_8, window_bounds = array<i64: 1, 2, 32>}, {transform_indices = @transform_9, window_bounds = array<i64: 1, 32, 64>}, {transform_indices = @transform_10, window_bounds = array<i64: 1, 4, 8, 32>}, {transform_indices = @transform_11, window_bounds = array<i64: 1, 32, 64>}, {transform_indices = @transform_12, window_bounds = array<i64: 1, 32, 64>}, {transform_indices = @transform_13, window_bounds = array<i64: 1, 64, 32>}, {pipeline_mode = #tpu.pipeline_mode<synchronous>, transform_indices = @transform_14, window_bounds = array<i64: 1, 32>}, {pipeline_mode = #tpu.pipeline_mode<synchronous>, transform_indices = @transform_15, window_bounds = array<i64: 32, 128>}, {pipeline_mode = #tpu.pipeline_mode<synchronous>, transform_indices = @transform_16, window_bounds = array<i64: 8, 128>}]} {
    %c0_i32 = arith.constant 0 : i32
    %0 = arith.cmpi eq, %arg0, %c0_i32 : i32
    %1 = arith.extui %0 : i1 to i32
    %c0_i32_0 = arith.constant 0 : i32
    %2 = arith.cmpi ne, %1, %c0_i32_0 : i32
    scf.if %2 {
      %c0_68 = arith.constant 0 : index
      %c0_69 = arith.constant 0 : index
      %155 = vector.load %arg1[%c0_68, %c0_69] : memref<8x32xf32, #tpu.memory_space<vmem>>, vector<8x32xf32>
      %c0_70 = arith.constant 0 : index
      %c0_71 = arith.constant 0 : index
      %156 = vector.load %arg19[%c0_70, %c0_71] : memref<8x32xf32, #tpu.memory_space<vmem>>, vector<8x32xf32>
      tpu.vector_store %arg19[%c0_70, %c0_71], %155 {strides = array<i32>} : memref<8x32xf32, #tpu.memory_space<vmem>>, vector<8x32xf32>,
    } else {
    }
    %c0_i32_1 = arith.constant 0 : i32
    %3 = arith.cmpi sgt, %arg0, %c0_i32_1 : i32
    %4 = arith.extui %3 : i1 to i32
    %c0_i32_2 = arith.constant 0 : i32
    %5 = arith.cmpi ne, %4, %c0_i32_2 : i32
    scf.if %5 {
      %c0_68 = arith.constant 0 : index
      %c0_69 = arith.constant 0 : index
      %155 = vector.load %arg18[%c0_68, %c0_69] : memref<8x32xf32, #tpu.memory_space<vmem>>, vector<8x32xf32>
      %c0_70 = arith.constant 0 : index
      %c0_71 = arith.constant 0 : index
      %156 = vector.load %arg19[%c0_70, %c0_71] : memref<8x32xf32, #tpu.memory_space<vmem>>, vector<8x32xf32>
      %157 = arith.addf %155, %156 : vector<8x32xf32>
      %c0_72 = arith.constant 0 : index
      %c0_73 = arith.constant 0 : index
      %158 = vector.load %arg19[%c0_72, %c0_73] : memref<8x32xf32, #tpu.memory_space<vmem>>, vector<8x32xf32>
      tpu.vector_store %arg19[%c0_72, %c0_73], %157 {strides = array<i32>} : memref<8x32xf32, #tpu.memory_space<vmem>>, vector<8x32xf32>,
    } else {
    }
    %c0 = arith.constant 0 : index
    %c0_3 = arith.constant 0 : index
    %6 = vector.load %arg19[%c0, %c0_3] : memref<8x32xf32, #tpu.memory_space<vmem>>, vector<8x32xf32>
    %c0_4 = arith.constant 0 : index
    %c0_5 = arith.constant 0 : index
    %c0_6 = arith.constant 0 : index
    %7 = vector.load %arg9[%c0_4, %c0_5, %c0_6] : memref<1x2x32xf32, #tpu.memory_space<vmem>>, vector<1x2x32xf32>
    %8 = vector.shape_cast %7 : vector<1x2x32xf32> to vector<2x32xf32>
    %9 = vector.extract_strided_slice %8 {offsets = [0, 0], sizes = [1, 32], strides = [1, 1]} : vector<2x32xf32> to vector<1x32xf32>
    %10 = arith.mulf %6, %6 : vector<8x32xf32>
    %cst = arith.constant dense<0.000000e+00> : vector<8xf32>
    %11 = vector.multi_reduction <add>, %10, %cst [1] : vector<8x32xf32> to vector<8xf32>
    %12 = vector.shape_cast %11 : vector<8xf32> to vector<8x1xf32>
    %cst_7 = arith.constant 3.200000e+01 : f32
    %13 = vector.broadcast %cst_7 : f32 to vector<8x1xf32>
    %14 = arith.divf %12, %13 : vector<8x1xf32>
    %cst_8 = arith.constant 9.99999997E-7 : f32
    %15 = vector.broadcast %cst_8 : f32 to vector<8x1xf32>
    %16 = arith.addf %14, %15 : vector<8x1xf32>
    %17 = math.rsqrt %16 : vector<8x1xf32>
    %18 = vector.broadcast %17 : vector<8x1xf32> to vector<8x32xf32>
    %19 = arith.mulf %6, %18 : vector<8x32xf32>
    %20 = vector.broadcast %9 : vector<1x32xf32> to vector<8x32xf32>
    %21 = arith.mulf %19, %20 : vector<8x32xf32>
    %22 = arith.truncf %21 : vector<8x32xf32> to vector<8x32xbf16>
    %c0_9 = arith.constant 0 : index
    %c0_10 = arith.constant 0 : index
    %c0_11 = arith.constant 0 : index
    %23 = vector.load %arg10[%c0_9, %c0_10, %c0_11] : memref<1x32x64xbf16, #tpu.memory_space<vmem>>, vector<1x32x64xbf16>
    %24 = vector.shape_cast %23 : vector<1x32x64xbf16> to vector<32x64xbf16>
    %cst_12 = arith.constant dense<0.000000e+00> : vector<8x64xf32>
    %25 = tpu.matmul %22, %24, %cst_12 {dimension_numbers = #tpu.dot_dimension_numbers<[1], [0], [0], [1], [0, 0, 1, 1], [], []>} : vector<8x32xbf16>, vector<32x64xbf16>, vector<8x64xf32> -> vector<8x64xf32>
    %26 = vector.extract_strided_slice %25 {offsets = [0, 0], sizes = [8, 32], strides = [1, 1]} : vector<8x64xf32> to vector<8x32xf32>
    %27 = vector.extract_strided_slice %25 {offsets = [0, 32], sizes = [8, 16], strides = [1, 1]} : vector<8x64xf32> to vector<8x16xf32>
    %28 = vector.extract_strided_slice %25 {offsets = [0, 48], sizes = [8, 16], strides = [1, 1]} : vector<8x64xf32> to vector<8x16xf32>
    %c0_13 = arith.constant 0 : index
    %c0_14 = arith.constant 0 : index
    %29 = vector.load %arg2[%c0_13, %c0_14] : memref<8x32xf32, #tpu.memory_space<vmem>>, vector<8x32xf32>
    %30 = arith.mulf %26, %29 : vector<8x32xf32>
    %31 = arith.truncf %26 : vector<8x32xf32> to vector<8x32xbf16>
    %c0_15 = arith.constant 0 : index
    %c0_16 = arith.constant 0 : index
    %32 = vector.load %arg6[%c0_15, %c0_16] : memref<32x32xbf16, #tpu.memory_space<vmem>>, vector<32x32xbf16>
    %cst_17 = arith.constant dense<0.000000e+00> : vector<8x32xf32>
    %33 = tpu.matmul %31, %32, %cst_17 {dimension_numbers = #tpu.dot_dimension_numbers<[1], [0], [0], [1], [0, 0, 1, 1], [], []>} : vector<8x32xbf16>, vector<32x32xbf16>, vector<8x32xf32> -> vector<8x32xf32>
    %c0_18 = arith.constant 0 : index
    %c0_19 = arith.constant 0 : index
    %34 = vector.load %arg3[%c0_18, %c0_19] : memref<8x32xf32, #tpu.memory_space<vmem>>, vector<8x32xf32>
    %35 = arith.mulf %33, %34 : vector<8x32xf32>
    %36 = arith.addf %30, %35 : vector<8x32xf32>
    %c0_20 = arith.constant 0 : index
    %c0_21 = arith.constant 0 : index
    %37 = vector.load %arg4[%c0_20, %c0_21] : memref<8x16xf32, #tpu.memory_space<vmem>>, vector<8x16xf32>
    %38 = arith.mulf %27, %37 : vector<8x16xf32>
    %39 = arith.truncf %27 : vector<8x16xf32> to vector<8x16xbf16>
    %c0_22 = arith.constant 0 : index
    %c0_23 = arith.constant 0 : index
    %40 = vector.load %arg7[%c0_22, %c0_23] : memref<16x16xbf16, #tpu.memory_space<vmem>>, vector<16x16xbf16>
    %cst_24 = arith.constant dense<0.000000e+00> : vector<8x16xf32>
    %41 = tpu.matmul %39, %40, %cst_24 {dimension_numbers = #tpu.dot_dimension_numbers<[1], [0], [0], [1], [0, 0, 1, 1], [], []>} : vector<8x16xbf16>, vector<16x16xbf16>, vector<8x16xf32> -> vector<8x16xf32>
    %c0_25 = arith.constant 0 : index
    %c0_26 = arith.constant 0 : index
    %42 = vector.load %arg5[%c0_25, %c0_26] : memref<8x16xf32, #tpu.memory_space<vmem>>, vector<8x16xf32>
    %43 = arith.mulf %41, %42 : vector<8x16xf32>
    %44 = arith.addf %38, %43 : vector<8x16xf32>
    %c0_27 = arith.constant 0 : index
    %c0_28 = arith.constant 0 : index
    %c0_29 = arith.constant 0 : index
    %c0_30 = arith.constant 0 : index
    %45 = vector.load %arg11[%c0_27, %c0_28, %c0_29, %c0_30] : memref<1x4x8x32xbf16, #tpu.memory_space<vmem>>, vector<1x4x8x32xbf16>
    %46 = vector.shape_cast %45 : vector<1x4x8x32xbf16> to vector<4x8x32xbf16>
    %47 = vector.extract_strided_slice %36 {offsets = [0, 0], sizes = [8, 8], strides = [1, 1]} : vector<8x32xf32> to vector<8x8xf32>
    %48 = vector.extract_strided_slice %36 {offsets = [0, 8], sizes = [8, 8], strides = [1, 1]} : vector<8x32xf32> to vector<8x8xf32>
    %49 = tpu.concatenate %47, %48 in 0 : vector<8x8xf32>, vector<8x8xf32> -> vector<16x8xf32>
    %50 = arith.truncf %49 : vector<16x8xf32> to vector<16x8xbf16>
    %51 = vector.extract_strided_slice %44 {offsets = [0, 0], sizes = [8, 8], strides = [1, 1]} : vector<8x16xf32> to vector<8x8xf32>
    %52 = arith.truncf %51 : vector<8x8xf32> to vector<8x8xbf16>
    %53 = vector.extract_strided_slice %28 {offsets = [0, 0], sizes = [8, 8], strides = [1, 1]} : vector<8x16xf32> to vector<8x8xf32>
    %54 = arith.truncf %53 : vector<8x8xf32> to vector<8x8xbf16>
    %55 = tpu.transpose %52, [1, 0] : vector<8x8xbf16> -> vector<8x8xbf16>
    %cst_31 = arith.constant dense<0.000000e+00> : vector<16x8xf32>
    %56 = tpu.matmul %50, %55, %cst_31 {dimension_numbers = #tpu.dot_dimension_numbers<[1], [0], [0], [1], [0, 0, 1, 1], [], []>} : vector<16x8xbf16>, vector<8x8xbf16>, vector<16x8xf32> -> vector<16x8xf32>
    %c0_32 = arith.constant 0 : index
    %c0_33 = arith.constant 0 : index
    %57 = vector.load %arg8[%c0_32, %c0_33] : memref<16x8xf32, #tpu.memory_space<vmem>>, vector<16x8xf32>
    %58 = arith.addf %56, %57 : vector<16x8xf32>
    %cst_34 = arith.constant dense<0xFF800000> : vector<16xf32>
    %59 = vector.multi_reduction <maximumf>, %58, %cst_34 [1] : vector<16x8xf32> to vector<16xf32>
    %60 = vector.shape_cast %59 : vector<16xf32> to vector<16x1xf32>
    %61 = vector.broadcast %60 : vector<16x1xf32> to vector<16x8xf32>
    %62 = arith.subf %58, %61 : vector<16x8xf32>
    %63 = math.exp %62 : vector<16x8xf32>
    %cst_35 = arith.constant dense<0.000000e+00> : vector<16xf32>
    %64 = vector.multi_reduction <add>, %63, %cst_35 [1] : vector<16x8xf32> to vector<16xf32>
    %65 = vector.shape_cast %64 : vector<16xf32> to vector<16x1xf32>
    %66 = tpu.reciprocal %65 {approx = true} : vector<16x1xf32> -> vector<16x1xf32>
    %67 = vector.broadcast %66 : vector<16x1xf32> to vector<16x8xf32>
    %68 = arith.mulf %63, %67 : vector<16x8xf32>
    %69 = arith.truncf %68 : vector<16x8xf32> to vector<16x8xbf16>
    %cst_36 = arith.constant dense<0.000000e+00> : vector<16x8xf32>
    %70 = tpu.matmul %69, %54, %cst_36 {dimension_numbers = #tpu.dot_dimension_numbers<[1], [0], [0], [1], [0, 0, 1, 1], [], []>} : vector<16x8xbf16>, vector<8x8xbf16>, vector<16x8xf32> -> vector<16x8xf32>
    %71 = vector.extract_strided_slice %70 {offsets = [0, 0], sizes = [8, 8], strides = [1, 1]} : vector<16x8xf32> to vector<8x8xf32>
    %72 = arith.truncf %71 : vector<8x8xf32> to vector<8x8xbf16>
    %73 = vector.extract_strided_slice %46 {offsets = [0, 0, 0], sizes = [1, 8, 32], strides = [1, 1, 1]} : vector<4x8x32xbf16> to vector<1x8x32xbf16>
    %74 = vector.shape_cast %73 : vector<1x8x32xbf16> to vector<8x32xbf16>
    %cst_37 = arith.constant dense<0.000000e+00> : vector<8x32xf32>
    %75 = tpu.matmul %72, %74, %cst_37 {dimension_numbers = #tpu.dot_dimension_numbers<[1], [0], [0], [1], [0, 0, 1, 1], [], []>} : vector<8x8xbf16>, vector<8x32xbf16>, vector<8x32xf32> -> vector<8x32xf32>
    %76 = arith.addf %6, %75 : vector<8x32xf32>
    %77 = vector.extract_strided_slice %70 {offsets = [8, 0], sizes = [8, 8], strides = [1, 1]} : vector<16x8xf32> to vector<8x8xf32>
    %78 = arith.truncf %77 : vector<8x8xf32> to vector<8x8xbf16>
    %79 = vector.extract_strided_slice %46 {offsets = [1, 0, 0], sizes = [1, 8, 32], strides = [1, 1, 1]} : vector<4x8x32xbf16> to vector<1x8x32xbf16>
    %80 = vector.shape_cast %79 : vector<1x8x32xbf16> to vector<8x32xbf16>
    %cst_38 = arith.constant dense<0.000000e+00> : vector<8x32xf32>
    %81 = tpu.matmul %78, %80, %cst_38 {dimension_numbers = #tpu.dot_dimension_numbers<[1], [0], [0], [1], [0, 0, 1, 1], [], []>} : vector<8x8xbf16>, vector<8x32xbf16>, vector<8x32xf32> -> vector<8x32xf32>
    %82 = arith.addf %76, %81 : vector<8x32xf32>
    %83 = vector.extract_strided_slice %36 {offsets = [0, 16], sizes = [8, 8], strides = [1, 1]} : vector<8x32xf32> to vector<8x8xf32>
    %84 = vector.extract_strided_slice %36 {offsets = [0, 24], sizes = [8, 8], strides = [1, 1]} : vector<8x32xf32> to vector<8x8xf32>
    %85 = tpu.concatenate %83, %84 in 0 : vector<8x8xf32>, vector<8x8xf32> -> vector<16x8xf32>
    %86 = arith.truncf %85 : vector<16x8xf32> to vector<16x8xbf16>
    %87 = vector.extract_strided_slice %44 {offsets = [0, 8], sizes = [8, 8], strides = [1, 1]} : vector<8x16xf32> to vector<8x8xf32>
    %88 = arith.truncf %87 : vector<8x8xf32> to vector<8x8xbf16>
    %89 = vector.extract_strided_slice %28 {offsets = [0, 8], sizes = [8, 8], strides = [1, 1]} : vector<8x16xf32> to vector<8x8xf32>
    %90 = arith.truncf %89 : vector<8x8xf32> to vector<8x8xbf16>
    %91 = tpu.transpose %88, [1, 0] : vector<8x8xbf16> -> vector<8x8xbf16>
    %cst_39 = arith.constant dense<0.000000e+00> : vector<16x8xf32>
    %92 = tpu.matmul %86, %91, %cst_39 {dimension_numbers = #tpu.dot_dimension_numbers<[1], [0], [0], [1], [0, 0, 1, 1], [], []>} : vector<16x8xbf16>, vector<8x8xbf16>, vector<16x8xf32> -> vector<16x8xf32>
    %c0_40 = arith.constant 0 : index
    %c0_41 = arith.constant 0 : index
    %93 = vector.load %arg8[%c0_40, %c0_41] : memref<16x8xf32, #tpu.memory_space<vmem>>, vector<16x8xf32>
    %94 = arith.addf %92, %93 : vector<16x8xf32>
    %cst_42 = arith.constant dense<0xFF800000> : vector<16xf32>
    %95 = vector.multi_reduction <maximumf>, %94, %cst_42 [1] : vector<16x8xf32> to vector<16xf32>
    %96 = vector.shape_cast %95 : vector<16xf32> to vector<16x1xf32>
    %97 = vector.broadcast %96 : vector<16x1xf32> to vector<16x8xf32>
    %98 = arith.subf %94, %97 : vector<16x8xf32>
    %99 = math.exp %98 : vector<16x8xf32>
    %cst_43 = arith.constant dense<0.000000e+00> : vector<16xf32>
    %100 = vector.multi_reduction <add>, %99, %cst_43 [1] : vector<16x8xf32> to vector<16xf32>
    %101 = vector.shape_cast %100 : vector<16xf32> to vector<16x1xf32>
    %102 = tpu.reciprocal %101 {approx = true} : vector<16x1xf32> -> vector<16x1xf32>
    %103 = vector.broadcast %102 : vector<16x1xf32> to vector<16x8xf32>
    %104 = arith.mulf %99, %103 : vector<16x8xf32>
    %105 = arith.truncf %104 : vector<16x8xf32> to vector<16x8xbf16>
    %cst_44 = arith.constant dense<0.000000e+00> : vector<16x8xf32>
    %106 = tpu.matmul %105, %90, %cst_44 {dimension_numbers = #tpu.dot_dimension_numbers<[1], [0], [0], [1], [0, 0, 1, 1], [], []>} : vector<16x8xbf16>, vector<8x8xbf16>, vector<16x8xf32> -> vector<16x8xf32>
    %107 = vector.extract_strided_slice %106 {offsets = [0, 0], sizes = [8, 8], strides = [1, 1]} : vector<16x8xf32> to vector<8x8xf32>
    %108 = arith.truncf %107 : vector<8x8xf32> to vector<8x8xbf16>
    %109 = vector.extract_strided_slice %46 {offsets = [2, 0, 0], sizes = [1, 8, 32], strides = [1, 1, 1]} : vector<4x8x32xbf16> to vector<1x8x32xbf16>
    %110 = vector.shape_cast %109 : vector<1x8x32xbf16> to vector<8x32xbf16>
    %cst_45 = arith.constant dense<0.000000e+00> : vector<8x32xf32>
    %111 = tpu.matmul %108, %110, %cst_45 {dimension_numbers = #tpu.dot_dimension_numbers<[1], [0], [0], [1], [0, 0, 1, 1], [], []>} : vector<8x8xbf16>, vector<8x32xbf16>, vector<8x32xf32> -> vector<8x32xf32>
    %112 = arith.addf %82, %111 : vector<8x32xf32>
    %113 = vector.extract_strided_slice %106 {offsets = [8, 0], sizes = [8, 8], strides = [1, 1]} : vector<16x8xf32> to vector<8x8xf32>
    %114 = arith.truncf %113 : vector<8x8xf32> to vector<8x8xbf16>
    %115 = vector.extract_strided_slice %46 {offsets = [3, 0, 0], sizes = [1, 8, 32], strides = [1, 1, 1]} : vector<4x8x32xbf16> to vector<1x8x32xbf16>
    %116 = vector.shape_cast %115 : vector<1x8x32xbf16> to vector<8x32xbf16>
    %cst_46 = arith.constant dense<0.000000e+00> : vector<8x32xf32>
    %117 = tpu.matmul %114, %116, %cst_46 {dimension_numbers = #tpu.dot_dimension_numbers<[1], [0], [0], [1], [0, 0, 1, 1], [], []>} : vector<8x8xbf16>, vector<8x32xbf16>, vector<8x32xf32> -> vector<8x32xf32>
    %118 = arith.addf %112, %117 : vector<8x32xf32>
    %c0_47 = arith.constant 0 : index
    %c0_48 = arith.constant 0 : index
    %119 = vector.load %arg19[%c0_47, %c0_48] : memref<8x32xf32, #tpu.memory_space<vmem>>, vector<8x32xf32>
    tpu.vector_store %arg19[%c0_47, %c0_48], %118 {strides = array<i32>} : memref<8x32xf32, #tpu.memory_space<vmem>>, vector<8x32xf32>,
    %120 = vector.extract_strided_slice %8 {offsets = [1, 0], sizes = [1, 32], strides = [1, 1]} : vector<2x32xf32> to vector<1x32xf32>
    %121 = arith.mulf %118, %118 : vector<8x32xf32>
    %cst_49 = arith.constant dense<0.000000e+00> : vector<8xf32>
    %122 = vector.multi_reduction <add>, %121, %cst_49 [1] : vector<8x32xf32> to vector<8xf32>
    %123 = vector.shape_cast %122 : vector<8xf32> to vector<8x1xf32>
    %cst_50 = arith.constant 3.200000e+01 : f32
    %124 = vector.broadcast %cst_50 : f32 to vector<8x1xf32>
    %125 = arith.divf %123, %124 : vector<8x1xf32>
    %cst_51 = arith.constant 9.99999997E-7 : f32
    %126 = vector.broadcast %cst_51 : f32 to vector<8x1xf32>
    %127 = arith.addf %125, %126 : vector<8x1xf32>
    %128 = math.rsqrt %127 : vector<8x1xf32>
    %129 = vector.broadcast %128 : vector<8x1xf32> to vector<8x32xf32>
    %130 = arith.mulf %118, %129 : vector<8x32xf32>
    %131 = vector.broadcast %120 : vector<1x32xf32> to vector<8x32xf32>
    %132 = arith.mulf %130, %131 : vector<8x32xf32>
    %133 = arith.truncf %132 : vector<8x32xf32> to vector<8x32xbf16>
    %c0_52 = arith.constant 0 : index
    %c0_53 = arith.constant 0 : index
    %c0_54 = arith.constant 0 : index
    %134 = vector.load %arg12[%c0_52, %c0_53, %c0_54] : memref<1x32x64xbf16, #tpu.memory_space<vmem>>, vector<1x32x64xbf16>
    %135 = vector.shape_cast %134 : vector<1x32x64xbf16> to vector<32x64xbf16>
    %cst_55 = arith.constant dense<0.000000e+00> : vector<8x64xf32>
    %136 = tpu.matmul %133, %135, %cst_55 {dimension_numbers = #tpu.dot_dimension_numbers<[1], [0], [0], [1], [0, 0, 1, 1], [], []>} : vector<8x32xbf16>, vector<32x64xbf16>, vector<8x64xf32> -> vector<8x64xf32>
    %c0_56 = arith.constant 0 : index
    %c0_57 = arith.constant 0 : index
    %c0_58 = arith.constant 0 : index
    %137 = vector.load %arg13[%c0_56, %c0_57, %c0_58] : memref<1x32x64xbf16, #tpu.memory_space<vmem>>, vector<1x32x64xbf16>
    %138 = vector.shape_cast %137 : vector<1x32x64xbf16> to vector<32x64xbf16>
    %cst_59 = arith.constant dense<0.000000e+00> : vector<8x64xf32>
    %139 = tpu.matmul %133, %138, %cst_59 {dimension_numbers = #tpu.dot_dimension_numbers<[1], [0], [0], [1], [0, 0, 1, 1], [], []>} : vector<8x32xbf16>, vector<32x64xbf16>, vector<8x64xf32> -> vector<8x64xf32>
    %140 = arith.negf %136 : vector<8x64xf32>
    %141 = math.exp %140 : vector<8x64xf32>
    %cst_60 = arith.constant 1.000000e+00 : f32
    %142 = vector.broadcast %cst_60 : f32 to vector<8x64xf32>
    %143 = arith.addf %142, %141 : vector<8x64xf32>
    %144 = arith.divf %142, %143 : vector<8x64xf32>
    %145 = arith.mulf %136, %144 : vector<8x64xf32>
    %146 = arith.mulf %145, %139 : vector<8x64xf32>
    %147 = arith.truncf %146 : vector<8x64xf32> to vector<8x64xbf16>
    %c0_61 = arith.constant 0 : index
    %c0_62 = arith.constant 0 : index
    %c0_63 = arith.constant 0 : index
    %148 = vector.load %arg14[%c0_61, %c0_62, %c0_63] : memref<1x64x32xbf16, #tpu.memory_space<vmem>>, vector<1x64x32xbf16>
    %149 = vector.shape_cast %148 : vector<1x64x32xbf16> to vector<64x32xbf16>
    %cst_64 = arith.constant dense<0.000000e+00> : vector<8x32xf32>
    %150 = tpu.matmul %147, %149, %cst_64 {dimension_numbers = #tpu.dot_dimension_numbers<[1], [0], [0], [1], [0, 0, 1, 1], [], []>} : vector<8x64xbf16>, vector<64x32xbf16>, vector<8x32xf32> -> vector<8x32xf32>
    %c0_65 = arith.constant 0 : index
    %c0_66 = arith.constant 0 : index
    %151 = vector.load %arg18[%c0_65, %c0_66] : memref<8x32xf32, #tpu.memory_space<vmem>>, vector<8x32xf32>
    tpu.vector_store %arg18[%c0_65, %c0_66], %150 {strides = array<i32>} : memref<8x32xf32, #tpu.memory_space<vmem>>, vector<8x32xf32>,
    %c1_i32 = arith.constant 1 : i32
    %152 = arith.cmpi eq, %arg0, %c1_i32 : i32
    %153 = arith.extui %152 : i1 to i32
    %c0_i32_67 = arith.constant 0 : i32
    %154 = arith.cmpi ne, %153, %c0_i32_67 : i32
    scf.if %154 {
      %c0_68 = arith.constant 0 : index
      %c0_69 = arith.constant 0 : index
      %155 = vector.load %arg18[%c0_68, %c0_69] : memref<8x32xf32, #tpu.memory_space<vmem>>, vector<8x32xf32>
      %c0_70 = arith.constant 0 : index
      %c0_71 = arith.constant 0 : index
      %156 = vector.load %arg19[%c0_70, %c0_71] : memref<8x32xf32, #tpu.memory_space<vmem>>, vector<8x32xf32>
      %157 = arith.addf %155, %156 : vector<8x32xf32>
      %c0_72 = arith.constant 0 : index
      %c0_73 = arith.constant 0 : index
      %158 = vector.load %arg15[%c0_72, %c0_73] : memref<1x32xf32, #tpu.memory_space<vmem>>, vector<1x32xf32>
      %159 = arith.mulf %157, %157 : vector<8x32xf32>
      %cst_74 = arith.constant dense<0.000000e+00> : vector<8xf32>
      %160 = vector.multi_reduction <add>, %159, %cst_74 [1] : vector<8x32xf32> to vector<8xf32>
      %161 = vector.shape_cast %160 : vector<8xf32> to vector<8x1xf32>
      %cst_75 = arith.constant 3.200000e+01 : f32
      %162 = vector.broadcast %cst_75 : f32 to vector<8x1xf32>
      %163 = arith.divf %161, %162 : vector<8x1xf32>
      %cst_76 = arith.constant 9.99999997E-7 : f32
      %164 = vector.broadcast %cst_76 : f32 to vector<8x1xf32>
      %165 = arith.addf %163, %164 : vector<8x1xf32>
      %166 = math.rsqrt %165 : vector<8x1xf32>
      %167 = vector.broadcast %166 : vector<8x1xf32> to vector<8x32xf32>
      %168 = arith.mulf %157, %167 : vector<8x32xf32>
      %169 = vector.broadcast %158 : vector<1x32xf32> to vector<8x32xf32>
      %170 = arith.mulf %168, %169 : vector<8x32xf32>
      %171 = arith.truncf %170 : vector<8x32xf32> to vector<8x32xbf16>
      %c0_77 = arith.constant 0 : index
      %c0_78 = arith.constant 0 : index
      %172 = vector.load %arg16[%c0_77, %c0_78] : memref<32x128xbf16, #tpu.memory_space<vmem>>, vector<32x128xbf16>
      %cst_79 = arith.constant dense<0.000000e+00> : vector<8x128xf32>
      %173 = tpu.matmul %171, %172, %cst_79 {dimension_numbers = #tpu.dot_dimension_numbers<[1], [0], [0], [1], [0, 0, 1, 1], [], []>} : vector<8x32xbf16>, vector<32x128xbf16>, vector<8x128xf32> -> vector<8x128xf32>
      %c0_80 = arith.constant 0 : index
      %c0_81 = arith.constant 0 : index
      %174 = vector.load %arg17[%c0_80, %c0_81] : memref<8x128xf32, #tpu.memory_space<vmem>>, vector<8x128xf32>
      tpu.vector_store %arg17[%c0_80, %c0_81], %173 {strides = array<i32>} : memref<8x128xf32, #tpu.memory_space<vmem>>, vector<8x128xf32>,
    } else {
    }
    return
  }
  func.func @transform_0(%arg0: i32) -> (i32, i32) {
    %c0_i32 = arith.constant 0 : i32
    %c0_i32_0 = arith.constant 0 : i32
    %c0_i32_1 = arith.constant 0 : i32
    return %c0_i32, %c0_i32_0 : i32, i32
  }
  func.func @transform_1(%arg0: i32) -> (i32, i32) {
    %c0_i32 = arith.constant 0 : i32
    %c0_i32_0 = arith.constant 0 : i32
    %c0_i32_1 = arith.constant 0 : i32
    return %c0_i32, %c0_i32_0 : i32, i32
  }
  func.func @transform_2(%arg0: i32) -> (i32, i32) {
    %c0_i32 = arith.constant 0 : i32
    %c0_i32_0 = arith.constant 0 : i32
    %c0_i32_1 = arith.constant 0 : i32
    return %c0_i32, %c0_i32_0 : i32, i32
  }
  func.func @transform_3(%arg0: i32) -> (i32, i32) {
    %c0_i32 = arith.constant 0 : i32
    %c0_i32_0 = arith.constant 0 : i32
    %c0_i32_1 = arith.constant 0 : i32
    return %c0_i32, %c0_i32_0 : i32, i32
  }
  func.func @transform_4(%arg0: i32) -> (i32, i32) {
    %c0_i32 = arith.constant 0 : i32
    %c0_i32_0 = arith.constant 0 : i32
    %c0_i32_1 = arith.constant 0 : i32
    return %c0_i32, %c0_i32_0 : i32, i32
  }
  func.func @transform_5(%arg0: i32) -> (i32, i32) {
    %c0_i32 = arith.constant 0 : i32
    %c0_i32_0 = arith.constant 0 : i32
    %c0_i32_1 = arith.constant 0 : i32
    return %c0_i32, %c0_i32_0 : i32, i32
  }
  func.func @transform_6(%arg0: i32) -> (i32, i32) {
    %c0_i32 = arith.constant 0 : i32
    %c0_i32_0 = arith.constant 0 : i32
    %c0_i32_1 = arith.constant 0 : i32
    return %c0_i32, %c0_i32_0 : i32, i32
  }
  func.func @transform_7(%arg0: i32) -> (i32, i32) {
    %c0_i32 = arith.constant 0 : i32
    %c0_i32_0 = arith.constant 0 : i32
    %c0_i32_1 = arith.constant 0 : i32
    return %c0_i32, %c0_i32_0 : i32, i32
  }
  func.func @transform_8(%arg0: i32) -> (i32, i32, i32) {
    %c0_i32 = arith.constant 0 : i32
    %c0_i32_0 = arith.constant 0 : i32
    %c0_i32_1 = arith.constant 0 : i32
    return %arg0, %c0_i32, %c0_i32_0 : i32, i32, i32
  }
  func.func @transform_9(%arg0: i32) -> (i32, i32, i32) {
    %c0_i32 = arith.constant 0 : i32
    %c0_i32_0 = arith.constant 0 : i32
    %c0_i32_1 = arith.constant 0 : i32
    return %arg0, %c0_i32, %c0_i32_0 : i32, i32, i32
  }
  func.func @transform_10(%arg0: i32) -> (i32, i32, i32, i32) {
    %c0_i32 = arith.constant 0 : i32
    %c0_i32_0 = arith.constant 0 : i32
    %c0_i32_1 = arith.constant 0 : i32
    %c0_i32_2 = arith.constant 0 : i32
    return %arg0, %c0_i32, %c0_i32_0, %c0_i32_1 : i32, i32, i32, i32
  }
  func.func @transform_11(%arg0: i32) -> (i32, i32, i32) {
    %c0_i32 = arith.constant 0 : i32
    %c0_i32_0 = arith.constant 0 : i32
    %c0_i32_1 = arith.constant 0 : i32
    return %arg0, %c0_i32, %c0_i32_0 : i32, i32, i32
  }
  func.func @transform_12(%arg0: i32) -> (i32, i32, i32) {
    %c0_i32 = arith.constant 0 : i32
    %c0_i32_0 = arith.constant 0 : i32
    %c0_i32_1 = arith.constant 0 : i32
    return %arg0, %c0_i32, %c0_i32_0 : i32, i32, i32
  }
  func.func @transform_13(%arg0: i32) -> (i32, i32, i32) {
    %c0_i32 = arith.constant 0 : i32
    %c0_i32_0 = arith.constant 0 : i32
    %c0_i32_1 = arith.constant 0 : i32
    return %arg0, %c0_i32, %c0_i32_0 : i32, i32, i32
  }
  func.func @transform_14(%arg0: i32) -> (i32, i32) {
    %c0_i32 = arith.constant 0 : i32
    %c0_i32_0 = arith.constant 0 : i32
    %c0_i32_1 = arith.constant 0 : i32
    return %c0_i32, %c0_i32_0 : i32, i32
  }
  func.func @transform_15(%arg0: i32) -> (i32, i32) {
    %c0_i32 = arith.constant 0 : i32
    %c0_i32_0 = arith.constant 0 : i32
    %c0_i32_1 = arith.constant 0 : i32
    return %c0_i32, %c0_i32_0 : i32, i32
  }
  func.func @transform_16(%arg0: i32) -> (i32, i32) {
    %c0_i32 = arith.constant 0 : i32
    %c0_i32_0 = arith.constant 0 : i32
    %c0_i32_1 = arith.constant 0 : i32
    return %c0_i32, %c0_i32_0 : i32, i32
  }
}

</mosaic_0001>

<bundles_post_ra>
// kernel: tile.29
= control target key start
LH: loop header
LB: loop body
LE: loop exit
PB: predicated region body
PF: predicated region fallthrough
CT: control target
= control target key end

     0   :  { %vm42_vm0 = vcmask 1047556   ;;  %vm44_vm1 = vcmask 64512   ;;  %s93_s22 = smov 8   ;;  %s94_s25 = smov 16   ;;  %vm54_vm2 = vcmask 261312   ;;  %vm64_vm3 = vcmask 195712   ;;  %s146_s0 = inlined_call_operand.vmem [shape: f32[8,4,8], index: 0, kind: input, shape index: {}]   ;;  %s147_s1 = inlined_call_operand.vmem [shape: f32[8,32], index: 1, kind: output, shape index: {}]  }
   0x1   :  { %v82_v0 = vld [vmem:[%s146_s0 + $0x1c] sm:$0xf]  ;;  %v83_v1 = vld [vmem:[%s146_s0 + $0x18] sm:$0xf]  ;;  %v84_v2 = vld [vmem:[%s146_s0 + $0x14] sm:$0xf] }
   0x2   :  { %8 = vst [vmem:[#allocation0 + $0x38] sm:$0xf] %v82_v0  ;;  %13 = vst [vmem:[#allocation0 + $0x30] sm:$0xf] %v83_v1  ;;  %v85_v3 = vld [vmem:[%s146_s0 + $0x10] sm:$0xf] }
   0x3   :  { %18 = vst [vmem:[#allocation0 + $0x28] sm:$0xf] %v84_v2  ;;  %v86_v4 = vld [vmem:[%s146_s0 + $0xc] sm:$0xf]  ;;  %v87_v5 = vld [vmem:[%s146_s0 + $0x8] sm:$0xf] }
   0x4   :  { %23 = vst [vmem:[#allocation0 + $0x20] sm:$0xf] %v85_v3  ;;  %28 = vst [vmem:[#allocation0 + $0x18] sm:$0xf] %v86_v4  ;;  %v88_v6 = vld [vmem:[%s146_s0 + $0x4] sm:$0xf] }
   0x5   :  { %33 = vst [vmem:[#allocation0 + $0x10] sm:$0xf] %v87_v5  ;;  %v38_v7 = vld [vmem:[%s146_s0] sm:$0xf]  ;;  %37 = vst [vmem:[#allocation0 + $0x8] sm:$0xf] %v88_v6 }
   0x6   :  { %39 = vst [vmem:[#allocation0] sm:$0xf] %v38_v7  ;;  %s92_s0 = smov 24   ;;  %vm74_vm4 = vcmask 130112  }
   0xb   :  { %v49_v8 = vld [vmem:[#allocation0 + $0x3] ss:$8 sm:$0xf0]   ;;  %v59_v9 = vld [vmem:[#allocation0 + $0x2] ss:$8 sm:$0xf0]  }
   0xc   :  { %v69_v14 = vld [vmem:[#allocation0 + $0x1] ss:$8 sm:$0xf0]   ;;  %v41_v17 = vld [vmem:[#allocation0] ss:$8 sm:$0xf0]  }
   0xd   :  { %v47_v10 = vld [vmem:[#allocation0 + $0x3] ss:$8 sm:$0xf]   ;;  %v57_v11 = vld [vmem:[#allocation0 + $0x2] ss:$8 sm:$0xf]  }
   0xe   :  { %v51_v12 = vsel %vm42_vm0, %v49_v8, %v47_v10  ;;  %v67_v13 = vld [vmem:[#allocation0 + $0x1] ss:$8 sm:$0xf]   ;;  %v40_v16 = vld [vmem:[#allocation0] ss:$8 sm:$0xf]   ;;  %v61_v18 = vsel %vm42_vm0, %v59_v9, %v57_v11 }
   0xf   :  { %52 = vrot.lane.b32.xlu0 %v51_v12, %s92_s0  ;;  %v71_v15 = vsel %vm42_vm0, %v69_v14, %v67_v13  ;;  %v43_v19 = vsel %vm42_vm0, %v41_v17, %v40_v16 }
  0x10   :  { %72 = vrot.lane.b32.xlu1 %v71_v15, %s93_s22  ;;  %45 = vst.msk [vmem:[%s147_s1] sm:$0xff] %vm44_vm1, %v43_v19  }
  0x13   :  { %62 = vrot.lane.b32.xlu0 %v61_v18, %s94_s25 }
  0x81   :  { %v53_v20 = vpop.permute.xlu0 %52  }
  0x82   :  { %55 = vst.msk [vmem:[%s147_s1] sm:$0xff] %vm54_vm2, %v53_v20   ;;  %v73_v21 = vpop.permute.xlu1 %72  }
  0x85   :  { %v63_v22 = vpop.permute.xlu0 %62  }
  0x86   :  { %65 = vst.msk [vmem:[%s147_s1] sm:$0xff] %vm64_vm3, %v63_v22  }
  0x87   :  { %75 = vst.msk [vmem:[%s147_s1] sm:$0xff] %vm74_vm4, %v73_v21  }

// kernel: tile.39
= control target key start
LH: loop header
LB: loop body
LE: loop exit
PB: predicated region body
PF: predicated region fallthrough
CT: control target
= control target key end

     0   :  { %vm42_vm0 = vcmask 1047556   ;;  %vm44_vm1 = vcmask 64512   ;;  %vm54_vm2 = vcmask 130112   ;;  %s111_s0 = inlined_call_operand.vmem [shape: f32[8,2,8], index: 0, kind: input, shape index: {}]   ;;  %s112_s1 = inlined_call_operand.vmem [shape: f32[8,16], index: 1, kind: output, shape index: {}]  }
   0x1   :  { %v62_v0 = vld [vmem:[%s111_s0 + $0xe] sm:$0x3]  ;;  %v63_v1 = vld [vmem:[%s111_s0 + $0xc] sm:$0x3]  ;;  %v64_v2 = vld [vmem:[%s111_s0 + $0xa] sm:$0x3] }
   0x2   :  { %8 = vst [vmem:[#allocation0 + $0x38] sm:$0x3] %v62_v0  ;;  %13 = vst [vmem:[#allocation0 + $0x30] sm:$0x3] %v63_v1  ;;  %v65_v3 = vld [vmem:[%s111_s0 + $0x8] sm:$0x3] }
   0x3   :  { %18 = vst [vmem:[#allocation0 + $0x28] sm:$0x3] %v64_v2  ;;  %v66_v4 = vld [vmem:[%s111_s0 + $0x6] sm:$0x3]  ;;  %v67_v5 = vld [vmem:[%s111_s0 + $0x4] sm:$0x3] }
   0x4   :  { %23 = vst [vmem:[#allocation0 + $0x20] sm:$0x3] %v65_v3  ;;  %28 = vst [vmem:[#allocation0 + $0x18] sm:$0x3] %v66_v4  ;;  %v68_v6 = vld [vmem:[%s111_s0 + $0x2] sm:$0x3] }
   0x5   :  { %33 = vst [vmem:[#allocation0 + $0x10] sm:$0x3] %v67_v5  ;;  %v38_v7 = vld [vmem:[%s111_s0] sm:$0x3]  ;;  %37 = vst [vmem:[#allocation0 + $0x8] sm:$0x3] %v68_v6 }
   0x6   :  { %39 = vst [vmem:[#allocation0] sm:$0x3] %v38_v7  ;;  %s70_s0 = smov 8  }
   0xb   :  { %v41_v8 = vld [vmem:[#allocation0] ss:$8 sm:$0xf0]   ;;  %v49_v9 = vld [vmem:[#allocation0 + $0x1] ss:$8 sm:$0xf0]  }
   0xd   :  { %v40_v10 = vld [vmem:[#allocation0] ss:$8 sm:$0xf]   ;;  %v47_v11 = vld [vmem:[#allocation0 + $0x1] ss:$8 sm:$0xf]  }
   0xe   :  { %v43_v12 = vsel %vm42_vm0, %v41_v8, %v40_v10  ;;  %v51_v13 = vsel %vm42_vm0, %v49_v9, %v47_v11 }
   0xf   :  { %52 = vrot.lane.b32.xlu0 %v51_v13, %s70_s0  ;;  %45 = vst.msk [vmem:[%s112_s1] sm:$0xff] %vm44_vm1, %v43_v12  }
  0x81   :  { %v53_v14 = vpop.permute.xlu0 %52  }
  0x82   :  { %55 = vst.msk [vmem:[%s112_s1] sm:$0xff] %vm54_vm2, %v53_v14  }

// kernel: llama_forward.1
= control target key start
LH: loop header
LB: loop body
LE: loop exit
PB: predicated region body
PF: predicated region fallthrough
CT: control target
= control target key end

     0   :  { %s2341_s0 = inlined_call_operand.vmem [shape: f32[8,32], index: 0, kind: input, shape index: {}]   ;;  %s2342_s1 = inlined_call_operand.vmem [shape: f32[8,32], index: 1, kind: input, shape index: {}]   ;;  %s2343_s2 = inlined_call_operand.vmem [shape: f32[8,32], index: 2, kind: input, shape index: {}]   ;;  %s2344_s3 = inlined_call_operand.vmem [shape: f32[8,16], index: 3, kind: input, shape index: {}]   ;;  %s2345_s4 = inlined_call_operand.vmem [shape: f32[8,16], index: 4, kind: input, shape index: {}]   ;;  %s2346_s5 = inlined_call_operand.vmem [shape: bf16[32,32], index: 5, kind: input, shape index: {}]   ;;  %s2347_s6 = inlined_call_operand.vmem [shape: bf16[16,16], index: 6, kind: input, shape index: {}]   ;;  %s2348_s7 = inlined_call_operand.vmem [shape: f32[16,8], index: 7, kind: input, shape index: {}]   ;;  %s2349_s8 = inlined_call_operand.vmem [shape: f32[2,2,32], index: 8, kind: input, shape index: {}]   ;;  %s2350_s9 = inlined_call_operand.vmem [shape: bf16[2,32,64], index: 9, kind: input, shape index: {}]   ;;  %s2351_s10 = inlined_call_operand.vmem [shape: bf16[2,4,8,32], index: 10, kind: input, shape index: {}]   ;;  %s2352_s11 = inlined_call_operand.vmem [shape: bf16[2,32,64], index: 11, kind: input, shape index: {}]   ;;  %s2353_s12 = inlined_call_operand.vmem [shape: bf16[2,32,64], index: 12, kind: input, shape index: {}]   ;;  %s2354_s13 = inlined_call_operand.vmem [shape: bf16[2,64,32], index: 13, kind: input, shape index: {}]   ;;  %s2355_s14 = inlined_call_operand.vmem [shape: f32[1,32], index: 14, kind: input, shape index: {}]   ;;  %s2356_s15 = inlined_call_operand.vmem [shape: bf16[32,128], index: 15, kind: input, shape index: {}]   ;;  %s2357_s16 = inlined_call_operand.hbm [shape: f32[8,128], index: 16, kind: output, shape index: {}]  }
   0x1   :  { %2361 = sst [smem:[#allocation8_spill]] %s2341_s0 }
   0x2   :  { %2362 = sst [smem:[#allocation9_spill]] %s2349_s8 }
   0x3   :  { %2363 = sst [smem:[#allocation10_spill]] %s2355_s14 }
   0x4   :  { %2364 = sst [smem:[#allocation11_spill]] %s2356_s15 }
   0x5   :  { %2365 = sst [smem:[#allocation12_spill]] %s2357_s16 }
   0x6   :  { %21 = vsyncpa [#allocation5], 0  ;;  %s2108_s21 = smov 0  }
   0x7 LB: > { %2366 = sst [smem:[#allocation7_spill]] %s2009_s21  ;;  %s2114_s22 = sadd.s32 4294967295, %s2009_s21   ;;  %s2009_s21 = sphi %s2108_s21, %s27_s21  }
   0x8   : > { %p1693_p0 = scmp.ge.s32.totalorder %s2009_s21, 1  ;;  %p507_p1 = scmp.lt.s32.totalorder %s2009_s21, 3 }
   0xa   : > { %p508_p2 = pnand %p1693_p0, %p507_p1 }
   0xb   : > { %p576_p3 = scmp.lt.s32.totalorder (!%p508_p2), %s2114_s22, 1  ;;  %s2367_s8 = sld [smem:[#allocation9_spill]] (!%p508_p2) }
   0xc   : > { %511 = sbr.rel (%p508_p2) target bundleno = 3561 (0xde9), region = 84  ;;  %p1705_p4 = scmp.ne.s32.totalorder (!%p508_p2), %s2114_s22, 0 }
  0x13   : > { %s577_s23 = scalar_select %p576_p3, %s2114_s22, 1 }
  0x14   : > { %609 = sbr.rel (%p1705_p4) target bundleno = 33 (0x21), region = 88  ;;  %vm611_vm0 = vcmask (!%p1705_p4), 261120  }
  0x15   : > { %s1694_s24 = sshll.u32 %s577_s23, 1  ;;  %s1744_s25 = sshll.u32 %s577_s23, 4 }
  0x16   : > { %s2123_s28 = scalar_lea.vmem %s2367_s8, %s1694_s24  ;;  %s2128_s0 = scalar_lea.vmem %s2350_s9, %s1744_s25 }
  0x17   : > { %s2133_s19 = scalar_lea.vmem %s2351_s10, %s1744_s25  ;;  %s2138_s16 = scalar_lea.vmem %s2352_s11, %s1744_s25 }
  0x18   : > { %s2143_s24 = scalar_lea.vmem %s2353_s12, %s1744_s25  ;;  %s1748_s26 = sshll.u32 %s577_s23, 5 }
  0x19   : > { %s2148_s30 = scalar_lea.vmem %s2354_s13, %s1748_s26  ;;  %s2368_s8 = sld [smem:[#allocation8_spill]] (!%p1705_p4) }
  0x1f   : > { %v610_v0 = vld [vmem:[%s2368_s8] sm:$0xff] }
  0x20   : > { %612 = vst.msk [vmem:[#allocation3] sm:$0xff] %vm611_vm0, %v610_v0 }
  0x21 PF: > { %p1706_p5 = scmp.le.s32.totalorder %s2114_s22, 0 }
  0x22   : > { %v617_v1 = vld [vmem:[#allocation2] sm:$0xff] (!%p1706_p5)  ;;  %vm620_vm1 = vcmask (!%p1706_p5), 261120  }
  0x23   : > { %616 = sbr.rel (%p1706_p5) target bundleno = 43 (0x2b), region = 92 }
  0x27   : > { %v618_v2 = vld [vmem:[#allocation3] sm:$0xff] (!%p1706_p5) }
  0x28   : > { %v619_v3 = vadd.f32 (!%p1706_p5), %v618_v2, %v617_v1 }
  0x2a   : > { %621 = vst.msk [vmem:[#allocation3] sm:$0xff] %vm620_vm1, %v619_v3 }
  0x2b PF: > { %vm625_vm2 = vcmask 261120   ;;  %v1932_v7 = vld [vmem:[%s2128_s0] sm:$0xff]   ;;  %v2011_v8 = vmov 0.0   ;;  %vm2012_vm3 = vmmov 0   ;;  %v1933_v9 = vld [vmem:[%s2128_s0 + $0x8] sm:$0xff]   ;;  %v634_v10 = vlaneseq  ;;  %s2013_s23 = smov 32  }
  0x2c   : > { %1787 = vmatprep.subr.bf16.mxu0 %v2011_v8  ;;  %1791 = vmatprep.mubr.msk.bf16.mxu0 %vm2012_vm3, %v2011_v8  ;;  %v764_v13 = vld [vmem:[%s2344_s3] sm:$0xff]  ;;  %v1935_v26 = vld [vmem:[%s2346_s5 + $0x8] sm:$0xff]   ;;  %s2014_s26 = smov 96   ;;  %vm781_vm4 = vcmask 130048   ;;  %s2015_s15 = smov 120   ;;  %vm847_vm5 = vcmask 64512  }
  0x2d   : > { %1788 = vmatpush3.bf16.msra.mxu0 %v1932_v7  ;;  %1795 = vmatprep.subr.bf16.mxu1 %v2011_v8  ;;  %v635_v11 = vshrl.u32 %v634_v10, 7  ;;  %v1934_v14 = vld [vmem:[%s2346_s5] sm:$0xff]   ;;  %v2225_v60 = vld [vmem:[%s2348_s7 + $0x8] sm:$0xff]  ;;  %s2016_s0 = smov 80   ;;  %vm923_vm6 = vcmask 1043456   ;;  %s2017_s20 = smov 88  }
  0x2e   : > { %1789 = vmatprep.subr.bf16.mxu0 %v2011_v8  ;;  %1799 = vmatprep.mubr.msk.bf16.mxu1 %vm2012_vm3, %v2011_v8  ;;  %v623_v15 = vld [vmem:[%s2123_s28] sm:$0x3]  ;;  %s2019_s27 = smov 72   ;;  %vm1455_vm7 = vcmask 523264   ;;  %p1735_p6 = scmp.ne.s32.totalorder %s2114_s22, 1 }
  0x2f   : > { %v1295_v12 = vsub.s32 1, %v635_v11  ;;  %766 = vrot.lane.b32.xlu1 %v764_v13, %s2013_s23  ;;  %1796 = vmatpush3.bf16.msra.mxu1 %v1934_v14  ;;  %v636_v20 = vsub.s32 0, %v635_v11  ;;  %v1936_v27 = vld [vmem:[%s2347_s6] sm:$0xff]   ;;  %vm2021_vm8 = vmmov (!%p1735_p6), 0   ;;  %s2370_s8 = sld [smem:[#allocation10_spill]] (!%p1735_p6) }
  0x30   : > { %1797 = vmatprep.subr.bf16.mxu1 %v2011_v8  ;;  %v699_v34 = vld [vmem:[%s2342_s1] sm:$0xff] }
  0x31   : > { %v2155_v4 = vld [vmem:[#allocation3] sm:$0xff]  ;;  %1790 = vmatpush3.bf16.msra.mxu0 %v1933_v9  ;;  %v2178_v16 = vrot.slane %v623_v15, %v1295_v12  ;;  %v637_v21 = vrot.slane %v623_v15, %v636_v20  ;;  %v761_v35 = vld [vmem:[%s2343_s2] sm:$0xff] }
  0x32   : > { %v624_v5 = vmul.f32 %v2155_v4, %v2155_v4  ;;  %1803 = vmatprep.subr.bf16.mxu0 %v2011_v8  ;;  %v825_v43 = vld [vmem:[%s2345_s4] sm:$0xff] }
  0x33   : > { %1798 = vmatpush3.bf16.msra.mxu1 %v1935_v26  ;;  %v2220_v58 = vld [vmem:[%s2348_s7] sm:$0xff] }
  0x34   : > { %v626_v6 = vsel %vm625_vm2, %v624_v5, 0.0  ;;  %1809 = vmatprep.subr.bf16.mxu1 %v2011_v8 }
  0x35   : > { %627 = vadd.xlane.f32.xlu0 %v626_v6 }
  0xa1   : > { %v767_v49 = vpop.permute.xlu1 %766 }
  0xc2   : > { %v628_v17 = vpop.xlane.xlu0 %627 }
  0xc3   : > { %v630_v18 = vmul.f32 0.03125, %v628_v17 }
  0xc5   : > { %v631_v19 = vadd.f32 1e-06, %v630_v18 }
  0xc7   : > { %1945 = vrsqrt.f32 %v631_v19 }
  0xd1   : > { %v1946_v22 = vpop.eup %1945 }
  0xd2   : > { %v633_v23 = vmul.f32 %v1946_v22, %v2155_v4 }
  0xd4   : > { %v638_v24 = vmul.f32 %v637_v21, %v633_v23 }
  0xd6   : > { %v639_v25 = vpack.c.bf16 %v638_v24, %v638_v24 }
  0xd8   : > { %1792 = vmatmul.mubr.msk.bf16.vlgmr.msra.gmra.mrb[0].mxu0 %vm625_vm2, %v639_v25 }
  0xd9   : > { %1805 = vmatprep.mubr.msk.bf16.mxu0 %vm2012_vm3, %v2011_v8  ;;  %1804 = vmatpush3.bf16.msra.mxu0 %v1936_v27 }
  0xda   : > { %1815 = vmatprep.subr.bf16.mxu0 %v2011_v8 }
 0x1ab   : > { %v693_v28 = vpop.f32.mrb[0].mxu0 }
 0x1ac   : > { %v2193_v29 = vpack.c.bf16 %v693_v28, %v693_v28  ;;  %v1793_v30 = vpop.f32.mrb[1].mxu0  ;;  %v700_v37 = vmul.f32 %v699_v34, %v693_v28  ;;  %v769_v50 = vmul.f32 %v767_v49, %v693_v28 }
 0x1ad   : > { %v696_v31 = vpop.f32.mrb[2].mxu0  ;;  %v832_v30 = vld [vmem:[%s2133_s19] sm:$0xf] }
 0x1ae   : > { %773 = vrot.lane.b32.xlu0 %v2193_v29, %s2014_s26  ;;  %v1794_v32 = vpop.f32.mrb[3].mxu0  ;;  %1800 = vmatmul.mubr.msk.bf16.vlgmr.msra.gmra.mrb[0].mxu1 %vm625_vm2, %v2193_v29  ;;  %v973_v31 = vsel %vm923_vm6, %v832_v30, 0  ;;  %v1939_v30 = vld [vmem:[%s2143_s24] sm:$0xff]  }
 0x1af   : > { %1811 = vmatprep.mubr.msk.bf16.mxu1 %vm2012_vm3, %v2011_v8  ;;  %v833_v32 = vld [vmem:[%s2133_s19 + $0x4] sm:$0xf] }
 0x220   : > { %v774_v33 = vpop.permute.xlu0 %773 }
 0x221   : > { %1806 = vmatmul.mubr.msk.bf16.vlgmr.msra.gmra.mrb[4].mxu0 %vm781_vm4, %v774_v33 }
 0x222   : > { %1817 = vmatprep.mubr.msk.bf16.mxu0 %vm2012_vm3, %v2011_v8 }
 0x281   : > { %v755_v36 = vpop.f32.mrb[0].mxu1 }
 0x282   : > { %v762_v38 = vmul.f32 %v761_v35, %v755_v36  ;;  %v1801_v39 = vpop.f32.mrb[1].mxu1  ;;  %v1021_v36 = vsel %vm923_vm6, %v833_v32, 0  ;;  %v1940_v32 = vld [vmem:[%s2143_s24 + $0x8] sm:$0xff]   ;;  %s2369_s24 = sld [smem:[#allocation11_spill]] (!%p1735_p6) }
 0x283   : > { %v758_v40 = vpop.f32.mrb[2].mxu1 }
 0x284   : > { %v763_v41 = vadd.f32 %v762_v38, %v700_v37  ;;  %v1802_v42 = vpop.f32.mrb[3].mxu1 }
 0x2f4   : > { %v819_v44 = vpop.f32.mrb[4].mxu0 }
 0x2f5   : > { %v826_v45 = vmul.f32 %v825_v43, %v819_v44  ;;  %v1807_v46 = vpop.f32.mrb[5].mxu0 }
 0x2f6   : > { %v822_v47 = vpop.f32.mrb[6].mxu0 }
 0x2f7   : > { %828 = vrot.lane.b32.xlu1 %v826_v45, %s2013_s23  ;;  %v1808_v48 = vpop.f32.mrb[7].mxu0 }
 0x369   : > { %v829_v51 = vpop.permute.xlu1 %828 }
 0x36a   : > { %v831_v52 = vadd.f32 %v829_v51, %v769_v50 }
 0x36c   : > { %v841_v53 = vpack.c.bf16 %v831_v52, %v831_v52 }
 0x36e   : > { %845 = vrot.lane.b32.xlu1 %v841_v53, %s2014_s26  ;;  %s2018_s26 = smov 112  }
 0x372   : > { %837 = vrot.lane.b32.xlu1 %v763_v41, %s2015_s15 }
 0x3e0   : > { %v846_v54 = vpop.permute.xlu1 %845 }
 0x3e1   : > { %v852_v55 = vsel %vm847_vm5, %v846_v54, 0 }
 0x3e2   : > { %1810 = vmatpush3.bf16.xpose.msra.mxu1 %v852_v55 }
 0x3e3   : > { %1821 = vmatprep.subr.bf16.mxu1 %v2011_v8 }
 0x3e4   : > { %v838_v56 = vpop.permute.xlu1 %837 }
 0x3e5   : > { %v840_v57 = vpack.c.bf16 %v838_v56, %v763_v41 }
 0x3e9   : > { %1812 = vmatmul.mubr.msk.bf16.vlgmr.msra.gmra.mrb[4].mxu1 %vm847_vm5, %v840_v57 }
 0x3ea   : > { %1823 = vmatprep.mubr.msk.bf16.mxu1 %vm2012_vm3, %v2011_v8  ;;  %1822 = vmatpush3.bf16.msra.mxu1 %v973_v31 }
 0x3eb   : > { %1827 = vmatprep.subr.bf16.mxu1 %v2011_v8 }
 0x4bc   : > { %v888_v59 = vpop.f32.mrb[4].mxu1 }
 0x4bd   : > { %v889_v61 = vadd.f32 %v888_v59, %v2220_v58  ;;  %v1813_v62 = vpop.f32.mrb[5].mxu1  ;;  %v834_v59 = vld [vmem:[%s2133_s19 + $0x8] sm:$0xf] }
 0x4be   : > { %v891_v63 = vpop.f32.mrb[6].mxu1 }
 0x4bf   : > { %v892_v0 = vadd.f32 %v891_v63, %v2225_v60  ;;  %v1814_v1 = vpop.f32.mrb[7].mxu1  ;;  %v895_v2 = vsel %vm847_vm5, %v889_v61, -inf }
 0x4c0   : > { %896 = vmax.xlane.f32.xlu1 %v895_v2 }
 0x4c1   : > { %v898_v3 = vsel %vm847_vm5, %v892_v0, -inf }
 0x4c2   : > { %899 = vmax.xlane.f32.xlu0 %v898_v3 }
 0x4d8   : > { %918 = vrot.lane.b32.xlu0 %v2193_v29, %s2016_s0 }
 0x54d   : > { %v897_v5 = vpop.xlane.xlu1 %896 }
 0x54e   : > { %v901_v6 = vsub.f32 %v889_v61, %v897_v5  ;;  %v835_v5 = vld [vmem:[%s2133_s19 + $0xc] sm:$0xf] }
 0x54f   : > { %v900_v7 = vpop.xlane.xlu0 %899 }
 0x550   : > { %v903_v9 = vmul.f32 1.442695, %v901_v6  ;;  %v902_v10 = vsub.f32 %v892_v0, %v900_v7 }
 0x552   : > { %1947 = vpow2.f32 %v903_v9  ;;  %v905_v11 = vmul.f32 1.442695, %v902_v10  ;;  %v1241_v10 = vsel %vm923_vm6, %v835_v5, 0 }
 0x553   : > { %v919_v12 = vpop.permute.xlu0 %918 }
 0x554   : > { %1949 = vpow2.f32 %v905_v11  ;;  %v925_v13 = vsel %vm923_vm6, %v919_v12, 0 }
 0x555   : > { %1816 = vmatpush3.bf16.msra.mxu0 %v925_v13 }
 0x556   : > { %1833 = vmatprep.subr.bf16.mxu0 %v2011_v8 }
 0x55c   : > { %v1948_v14 = vpop.eup %1947 }
 0x55d   : > { %v907_v15 = vsel %vm847_vm5, %v1948_v14, 0.0 }
 0x55e   : > { %v1950_v17 = vpop.eup %1949  ;;  %908 = vadd.xlane.f32.xlu1 %v907_v15 }
 0x55f   : > { %v910_v18 = vsel %vm847_vm5, %v1950_v17, 0.0 }
 0x562   : > { %911 = vadd.xlane.f32.xlu1 %v910_v18 }
 0x573   : > { %1067 = vrot.lane.b32.xlu1 %v841_v53, %s2017_s20 }
 0x577   : > { %1065 = vrot.lane.b32.xlu1 %v840_v57, %s2018_s26 }
 0x5eb   : > { %v909_v19 = vpop.xlane.xlu1 %908 }
 0x5ec   : > { %1951 = vrcp.f32 %v909_v19 }
 0x5ef   : > { %v912_v20 = vpop.xlane.xlu1 %911 }
 0x5f0   : > { %1953 = vrcp.f32 %v912_v20 }
 0x5f3   : > { %v1068_v25 = vpop.permute.xlu1 %1067 }
 0x5f4   : > { %v1073_v27 = vsel %vm847_vm5, %v1068_v25, 0 }
 0x5f6   : > { %v1952_v21 = vpop.eup %1951 }
 0x5f7   : > { %v915_v23 = vmul.f32 %v1952_v21, %v1948_v14  ;;  %v1066_v28 = vpop.permute.xlu1 %1065 }
 0x5fa   : > { %v1954_v22 = vpop.eup %1953 }
 0x5fb   : > { %v916_v24 = vmul.f32 %v1954_v22, %v1950_v17  ;;  %v1937_v22 = vld [vmem:[%s2138_s16] sm:$0xff]  }
 0x5fd   : > { %v917_v26 = vpack.c.bf16 %v916_v24, %v915_v23  ;;  %v1938_v23 = vld [vmem:[%s2138_s16 + $0x8] sm:$0xff]  }
 0x5ff   : > { %1818 = vmatmul.mubr.msk.bf16.vlgmr.msra.gmra.mrb[8].mxu0 %vm847_vm5, %v917_v26 }
 0x600   : > { %1834 = vmatpush3.bf16.xpose.msra.mxu0 %v1073_v27  ;;  %1835 = vmatprep.mubr.msk.bf16.mxu0 %vm2012_vm3, %v2011_v8 }
 0x601   : > { %1839 = vmatprep.subr.bf16.mxu0 %v2011_v8 }
 0x607   : > { %1836 = vmatmul.mubr.msk.bf16.vlgmr.msra.gmra.mrb[12].mxu0 %vm847_vm5, %v1066_v28 }
 0x608   : > { %1841 = vmatprep.mubr.msk.bf16.mxu0 %vm2012_vm3, %v2011_v8 }
 0x6d2   : > { %v961_v33 = vpop.f32.mrb[8].mxu0 }
 0x6d3   : > { %v968_v34 = vpack.c.bf16 %v961_v33, %v961_v33  ;;  %v1819_v35 = vpop.f32.mrb[9].mxu0  ;;  %v1941_v33 = vld [vmem:[%s2148_s30] sm:$0xff]  }
 0x6d4   : > { %v964_v37 = vpop.f32.mrb[10].mxu0  ;;  %v1944_v35 = vld [vmem:[%s2148_s30 + $0x18] sm:$0xff]  }
 0x6d5   : > { %v1820_v38 = vpop.f32.mrb[11].mxu0  ;;  %1824 = vmatmul.mubr.msk.bf16.vlgmr.msra.gmra.mrb[8].mxu1 %vm847_vm5, %v968_v34  ;;  %v1016_v46 = vpack.c.bf16 %v964_v37, %v964_v37  ;;  %v1943_v34 = vld [vmem:[%s2148_s30 + $0x10] sm:$0xff]  }
 0x6d6   : > { %1828 = vmatpush3.bf16.msra.mxu1 %v1021_v36  ;;  %1829 = vmatprep.mubr.msk.bf16.mxu1 %vm2012_vm3, %v2011_v8 }
 0x6d7   : > { %1845 = vmatprep.subr.bf16.mxu1 %v2011_v8 }
 0x6da   : > { %v1109_v39 = vpop.f32.mrb[12].mxu0 }
 0x6db   : > { %v1110_v40 = vadd.f32 %v1109_v39, %v2220_v58  ;;  %v1837_v41 = vpop.f32.mrb[13].mxu0 }
 0x6dc   : > { %v1112_v42 = vpop.f32.mrb[14].mxu0 }
 0x6dd   : > { %v1113_v43 = vadd.f32 %v1112_v42, %v2225_v60  ;;  %v1838_v44 = vpop.f32.mrb[15].mxu0  ;;  %v1116_v45 = vsel %vm847_vm5, %v1110_v40, -inf  ;;  %v1193_v60 = vsel %vm923_vm6, %v834_v59, 0  ;;  %v2020_v59 = vmov (!%p1735_p6), 0.0  }
 0x6de   : > { %1117 = vmax.xlane.f32.xlu0 %v1116_v45 }
 0x6df   : > { %v1119_v47 = vsel %vm847_vm5, %v1113_v43, -inf }
 0x6e0   : > { %1120 = vmax.xlane.f32.xlu1 %v1119_v47 }
 0x6e1   : > { %1830 = vmatmul.mubr.msk.bf16.vlgmr.msra.gmra.mrb[8].mxu1 %vm847_vm5, %v1016_v46 }
 0x6e2   : > { %1847 = vmatprep.mubr.msk.bf16.mxu1 %vm2012_vm3, %v2011_v8  ;;  %1846 = vmatpush3.bf16.msra.mxu1 %v1193_v60  ;;  %v1970_v60 = vld [vmem:[%s2369_s24 + $0x8] sm:$0xff] (!%p1735_p6)  }
 0x6e3   : > { %1851 = vmatprep.subr.bf16.mxu1 %v2011_v8 }
 0x6f1   : > { %1139 = vrot.lane.b32.xlu1 %v2193_v29, %s2019_s27 }
 0x76b   : > { %v1118_v48 = vpop.xlane.xlu0 %1117 }
 0x76c   : > { %v1122_v49 = vsub.f32 %v1110_v40, %v1118_v48 }
 0x76d   : > { %v1121_v50 = vpop.xlane.xlu1 %1120 }
 0x76e   : > { %v1124_v51 = vmul.f32 1.442695, %v1122_v49  ;;  %v1123_v52 = vsub.f32 %v1113_v43, %v1121_v50 }
 0x770   : > { %1955 = vpow2.f32 %v1124_v51  ;;  %v1126_v53 = vmul.f32 1.442695, %v1123_v52 }
 0x771   : > { %v1140_v54 = vpop.permute.xlu1 %1139 }
 0x772   : > { %1957 = vpow2.f32 %v1126_v53  ;;  %v1145_v55 = vsel %vm923_vm6, %v1140_v54, 0 }
 0x773   : > { %1840 = vmatpush3.bf16.msra.mxu0 %v1145_v55 }
 0x774   : > { %1857 = vmatprep.subr.bf16.mxu0 %v2011_v8 }
 0x77a   : > { %v1956_v56 = vpop.eup %1955 }
 0x77b   : > { %v1128_v57 = vsel %vm847_vm5, %v1956_v56, 0.0 }
 0x77c   : > { %v1958_v58 = vpop.eup %1957  ;;  %1129 = vadd.xlane.f32.xlu0 %v1128_v57 }
 0x77d   : > { %v1131_v29 = vsel %vm847_vm5, %v1958_v58, 0.0 }
 0x780   : > { %1132 = vadd.xlane.f32.xlu0 %v1131_v29  ;;  %v1969_v29 = vld [vmem:[%s2369_s24] sm:$0xff] (!%p1735_p6)  }
 0x809   : > { %v1130_v61 = vpop.xlane.xlu0 %1129 }
 0x80a   : > { %1959 = vrcp.f32 %v1130_v61 }
 0x80d   : > { %v1133_v62 = vpop.xlane.xlu0 %1132 }
 0x80e   : > { %1961 = vrcp.f32 %v1133_v62 }
 0x814   : > { %v1960_v63 = vpop.eup %1959 }
 0x815   : > { %v1136_v1 = vmul.f32 %v1960_v63, %v1956_v56 }
 0x818   : > { %v1962_v0 = vpop.eup %1961 }
 0x819   : > { %v1137_v2 = vmul.f32 %v1962_v0, %v1958_v58 }
 0x81b   : > { %v1138_v3 = vpack.c.bf16 %v1137_v2, %v1136_v1  ;;  %v1736_v1 = vld [vmem:[%s2370_s8] ss:$0 sm:$0xff] (!%p1735_p6) }
 0x81d   : > { %1842 = vmatmul.mubr.msk.bf16.vlgmr.msra.gmra.mrb[16].mxu0 %vm847_vm5, %v1138_v3 }
 0x81e   : > { %1861 = vmatprep.mubr.msk.bf16.mxu0 %vm2012_vm3, %v2011_v8  ;;  %1858 = vmatpush3.bf16.msra.mxu0 %v1937_v22 }
 0x81f   : > { %1859 = vmatprep.subr.bf16.mxu0 %v2011_v8 }
 0x822   : > { %1860 = vmatpush3.bf16.msra.mxu0 %v1938_v23 }
 0x823   : > { %1865 = vmatprep.subr.bf16.mxu0 %v2011_v8 }
 0x8f0   : > { %v1181_v6 = vpop.f32.mrb[16].mxu0 }
 0x8f1   : > { %v1188_v7 = vpack.c.bf16 %v1181_v6, %v1181_v6  ;;  %v1843_v9 = vpop.f32.mrb[17].mxu0 }
 0x8f2   : > { %v1184_v11 = vpop.f32.mrb[18].mxu0 }
 0x8f3   : > { %v1844_v12 = vpop.f32.mrb[19].mxu0  ;;  %1848 = vmatmul.mubr.msk.bf16.vlgmr.msra.gmra.mrb[8].mxu1 %vm847_vm5, %v1188_v7  ;;  %v1236_v13 = vpack.c.bf16 %v1184_v11, %v1184_v11 }
 0x8f4   : > { %1852 = vmatpush3.bf16.msra.mxu1 %v1241_v10  ;;  %1853 = vmatprep.mubr.msk.bf16.mxu1 %vm2012_vm3, %v2011_v8 }
 0x8f5   : > { %1873 = vmatprep.subr.bf16.mxu1 %v2011_v8 }
 0x8ff   : > { %1854 = vmatmul.mubr.msk.bf16.vlgmr.msra.gmra.mrb[8].mxu1 %vm847_vm5, %v1236_v13 }
 0x900   : > { %1881 = vmatprep.mubr.msk.bf16.mxu1 %vm2012_vm3, %v2011_v8  ;;  %1874 = vmatpush3.bf16.msra.mxu1 %v1941_v33 }
 0x901   : > { %1875 = vmatprep.subr.bf16.mxu1 %v2011_v8 }
 0x9d2   : > { %v1277_v14 = vpop.f32.mrb[8].mxu1 }
 0x9d3   : > { %v1893_v15 = vadd.f32 %v1277_v14, %v2155_v4  ;;  %v1855_v17 = vpop.f32.mrb[9].mxu1 }
 0x9d4   : > { %v1280_v18 = vpop.f32.mrb[10].mxu1 }
 0x9d5   : > { %1284 = vst.msk [vmem:[#allocation3] sm:$0xff] %vm625_vm2, %v1893_v15  ;;  %v1856_v19 = vpop.f32.mrb[11].mxu1  ;;  %v1285_v20 = vmul.f32 %v1893_v15, %v1893_v15 }
 0x9d7   : > { %v1286_v21 = vsel %vm625_vm2, %v1285_v20, 0.0 }
 0x9d8   : > { %1287 = vadd.xlane.f32.xlu0 %v1286_v21 }
 0x9dc   : > { %v1505_v55 = vld [vmem:[#allocation3] sm:$0xff] (!%p1735_p6) }
 0xa65   : > { %v1288_v4 = vpop.xlane.xlu0 %1287 }
 0xa66   : > { %v1289_v24 = vmul.f32 0.03125, %v1288_v4 }
 0xa68   : > { %v1290_v25 = vadd.f32 1e-06, %v1289_v24 }
 0xa6a   : > { %1963 = vrsqrt.f32 %v1290_v25 }
 0xa74   : > { %v1964_v26 = vpop.eup %1963 }
 0xa75   : > { %v1292_v27 = vmul.f32 %v1964_v26, %v1893_v15 }
 0xa77   : > { %v1297_v28 = vmul.f32 %v2178_v16, %v1292_v27  ;;  %v1942_v16 = vld [vmem:[%s2148_s30 + $0x8] sm:$0xff]  }
 0xa78   : > { %1876 = vmatpush3.bf16.msra.mxu1 %v1942_v16 }
 0xa79   : > { %v1298_v31 = vpack.c.bf16 %v1297_v28, %v1297_v28  ;;  %1877 = vmatprep.subr.bf16.mxu1 %v2011_v8 }
 0xa7b   : > { %1862 = vmatmul.mubr.msk.bf16.vlgmr.msra.gmra.mrb[20].mxu0 %vm625_vm2, %v1298_v31 }
 0xa7c   : > { %1866 = vmatpush3.bf16.msra.mxu0 %v1939_v30  ;;  %1869 = vmatprep.mubr.msk.bf16.mxu0 %vm2012_vm3, %v2011_v8 }
 0xa7d   : > { %1867 = vmatprep.subr.bf16.mxu0 %v2011_v8  ;;  %1878 = vmatpush3.bf16.msra.mxu1 %v1943_v34 }
 0xa7e   : > { %1879 = vmatprep.subr.bf16.mxu1 %v2011_v8 }
 0xa80   : > { %1868 = vmatpush3.bf16.msra.mxu0 %v1940_v32 }
 0xa81   : > { %1880 = vmatpush3.bf16.msra.mxu1 %v1944_v35  ;;  %1885 = vmatprep.subr.bf16.mxu0 (!%p1735_p6), %v2020_v59 }
 0xa83   : > { %1870 = vmatmul.mubr.msk.bf16.vlgmr.msra.gmra.mrb[24].mxu0 %vm625_vm2, %v1298_v31 }
 0xa84   : > { %1889 = vmatprep.mubr.msk.bf16.mxu0 (!%p1735_p6), %vm2021_vm8, %v2020_v59  ;;  %1886 = vmatpush3.bf16.msra.mxu0 (!%p1735_p6), %v1969_v29 }
 0xa85   : > { %1887 = vmatprep.subr.bf16.mxu0 (!%p1735_p6), %v2020_v59 }
 0xa88   : > { %1888 = vmatpush3.bf16.msra.mxu0 (!%p1735_p6), %v1970_v60 }
 0xb4e   : > { %v1352_v36 = vpop.f32.mrb[20].mxu0 }
 0xb4f   : > { %v1729_v37 = vmul.f32 -1.442695, %v1352_v36  ;;  %v1863_v38 = vpop.f32.mrb[21].mxu0 }
 0xb50   : > { %v1355_v39 = vpop.f32.mrb[22].mxu0 }
 0xb51   : > { %1965 = vpow2.f32 %v1729_v37  ;;  %v1864_v40 = vpop.f32.mrb[23].mxu0 }
 0xb56   : > { %v1408_v41 = vpop.f32.mrb[24].mxu0 }
 0xb57   : > { %v1871_v42 = vpop.f32.mrb[25].mxu0 }
 0xb58   : > { %v1411_v43 = vpop.f32.mrb[26].mxu0 }
 0xb59   : > { %v1872_v44 = vpop.f32.mrb[27].mxu0 }
 0xb5b   : > { %v1966_v45 = vpop.eup %1965 }
 0xb5c   : > { %v1417_v46 = vadd.f32 1.0, %v1966_v45 }
 0xb5e   : > { %1967 = vrcp.f32 %v1417_v46 }
 0xb68   : > { %v1968_v47 = vpop.eup %1967 }
 0xb69   : > { %v1420_v48 = vmul.f32 %v1968_v47, %v1352_v36 }
 0xb6b   : > { %v1421_v49 = vmul.f32 %v1420_v48, %v1408_v41 }
 0xb6d   : > { %v1422_v8 = vpack.c.bf16 %v1421_v49, %v1421_v49 }
 0xb6f   : > { %1882 = vmatmul.mubr.msk.bf16.vlgmr.msra.gmra.mrb[12].mxu1 %vm1455_vm7, %v1422_v8 }
 0xc3f   : > { %1503 = sbr.rel (%p1735_p6) target bundleno = 3530 (0xdca), region = 96 }
 0xc42   : > { %v1493_v50 = vpop.f32.mrb[12].mxu1 }
 0xc43   : > { %1499 = vst.msk [vmem:[#allocation2] sm:$0xff] %vm625_vm2, %v1493_v50  ;;  %v1883_v51 = vpop.f32.mrb[13].mxu1 }
 0xc44   : > { %v1496_v52 = vpop.f32.mrb[14].mxu1 }
 0xc45   : > { %v1884_v53 = vpop.f32.mrb[15].mxu1 }
 0xc4a   : > { %v1504_v54 = vld [vmem:[#allocation2] sm:$0xff] }
 0xc4b   : > { %v1506_v56 = vadd.f32 %v1505_v55, %v1504_v54 }
 0xc4d   : > { %v1508_v57 = vmul.f32 %v1506_v56, %v1506_v56 }
 0xc4f   : > { %v1509_v58 = vsel %vm625_vm2, %v1508_v57, 0.0 }
 0xc50   : > { %1510 = vadd.xlane.f32.xlu0 %v1509_v58 }
 0xcdd   : > { %v1511_v61 = vpop.xlane.xlu0 %1510 }
 0xcde   : > { %v1512_v62 = vmul.f32 0.03125, %v1511_v61 }
 0xce0   : > { %v1513_v63 = vadd.f32 1e-06, %v1512_v62 }
 0xce2   : > { %1971 = vrsqrt.f32 %v1513_v63 }
 0xcec   : > { %v1972_v0 = vpop.eup %1971 }
 0xced   : > { %v1515_v2 = vmul.f32 %v1972_v0, %v1506_v56 }
 0xcef   : > { %v1522_v3 = vmul.f32 %v1736_v1, %v1515_v2 }
 0xcf1   : > { %v1523_v5 = vpack.c.bf16 %v1522_v3, %v1522_v3 }
 0xcf3   : > { %1890 = vmatmul.mubr.msk.bf16.vlgmr.msra.gmra.mrb[0].mxu0 %vm625_vm2, %v1523_v5 }
 0xdc6   : > { %v1577_v6 = vpop.f32.mrb[0].mxu0 }
 0xdc7   : > { %1583 = vst [vmem:[#allocation4] sm:$0xff] %v1577_v6  ;;  %v1891_v7 = vpop.f32.mrb[1].mxu0 }
 0xdc8   : > { %v1580_v9 = vpop.f32.mrb[2].mxu0 }
 0xdc9   : > { %v1892_v10 = vpop.f32.mrb[3].mxu0 }
 0xdca PF: > { %p1910_p7 = scmp.eq.s32.totalorder %s2114_s22, 1  ;;  %s2022_s14 = smov [#allocation4]  }
 0xdcb   : > { %s1591_s15 = sshll.u32 %s2022_s14, 4  ;;  %s1592_s15 = int_to_ptr.vmem [resolvable:$true] %s1591_s15 }
 0xdcc   : > { %s1973_s21 = scalar_lea.vmem %s1592_s15, 128  ;;  %p1980_p11 = scmp.lt.s32.totalorder %s1592_s15, %s1592_s15 }
 0xdcd   : > { %p1974_p8 = scmp.ne.s32.totalorder %s1592_s15, %s1973_s21  ;;  %p1981_p12 = scmp.lt.s32.totalorder %s1973_s21, %s1973_s21 }
 0xdcf   : > { %p1975_p9 = pnand %p1974_p8, %p1910_p7  ;;  %p1982_p13 = por %p1981_p12, %p1980_p11 }
 0xdd1   : > { %p1976_p10 = pneg %p1975_p9 }
 0xdd3   : > { %p1983_p0 = pnand %p1982_p13, %p1976_p10 }
 0xdd5   : > { %1986 = shalt.err (!%p1983_p0)
}
 0xdd6   : > { %s2371_s28 = sld [smem:[#allocation12_spill]] }
 0xddc   : > { %s1987_s0 = scalar_lea.hbm %s2371_s28, 128 }
 0xddd   : > { %p1988_p1 = scmp.ne.s32.totalorder %s2371_s28, %s1987_s0  ;;  %p1993_p4 = scmp.lt.u32.totalorder %s1987_s0, %s2371_s28 }
 0xddf   : > { %p1989_p2 = pnand %p1988_p1, %p1910_p7 }
 0xde1   : > { %p1990_p3 = pneg %p1989_p2 }
 0xde3   : > { %p1995_p5 = pnand %p1993_p4, %p1990_p3 }
 0xde5   : > { %1998 = shalt.err (!%p1995_p5)
}
 0xde6   : > { %1907 = dma.vmem_to_hbm [thread:$0]  (%p1910_p7), %s1592_s15, 128, %s2371_s28, [#allocation5]  }
 0xde7   : > { %2004 = dma.done.wait (%p1910_p7), [#allocation5], 128  }
 0xde8   : > { %2006 = vsyncadd (%p1910_p7), [#allocation5], 4294967168 }
 0xde9 PF: > { %s2372_s29 = sld [smem:[#allocation7_spill]] }
 0xdef   : > { %s27_s21 = sadd.s32 1, %s2372_s29  }
 0xdf0   : > { %p24_p6 = scmp.ge.s32.totalorder %s27_s21, 4  }
 0xdf2   :  { %26 = sbr.rel (!%p24_p6) target bundleno = 7 (0x7), region = 138 }
 0xdf9   :  { %1604 = vsyncpa [#allocation5], 1 }
 0xdfa   :  { %1606 = vsyncpa [#allocation5 + $0x1], 1 }

</bundles_post_ra>
